<compile_context>
chip_gen: v5e
topology: v5e:2x2
jax: 0.10.0
libtpu: 0.0.40
codegen_flags: <defaults>
</compile_context>

<pallas_src>
import jax
import jax.numpy as jnp
from jax import lax
from jax.experimental import pallas as pl
from jax.experimental.pallas import tpu as pltpu

BN_EPS = 1e-5


def _gen_block(h_f32, w_ref, g_ref, be_ref):
    """Linear (bf16 MXU, bias cancelled by BN) -> BatchNorm1d (batch stats,
    affine folded) -> ReLU. All elementwise math in f32."""
    y = jnp.dot(h_f32.astype(jnp.bfloat16), w_ref[...],
                preferred_element_type=jnp.float32)
    inv_b = jnp.float32(1.0 / y.shape[0])
    # one-pass batch statistics (biased variance, matching PyTorch BN training)
    s1 = jnp.sum(y, axis=0, keepdims=True)
    s2 = jnp.sum(y * y, axis=0, keepdims=True)
    mean = s1 * inv_b
    var = jnp.maximum(s2 * inv_b - mean * mean, 0.0)
    # fold affine: y_hat = y*scale + shift
    scale = g_ref[...] * lax.rsqrt(var + BN_EPS)
    shift = be_ref[...] - mean * scale
    return jnp.maximum(y * scale + shift, 0.0)          # ReLU


def generator_kernel(x_ref,
                     w1, g1, be1,
                     w2, g2, be2,
                     w3, g3, be3,
                     w4, g4, be4,
                     w5, b5,
                     out_ref):
    h = x_ref[...].astype(jnp.float32)
    h = _gen_block(h, w1, g1, be1)
    h = _gen_block(h, w2, g2, be2)
    h = _gen_block(h, w3, g3, be3)
    h = _gen_block(h, w4, g4, be4)
    logits = jnp.dot(h.astype(jnp.bfloat16), w5[...],
                     preferred_element_type=jnp.float32) + b5[...]
    out_ref[...] = jax.nn.sigmoid(logits).astype(out_ref.dtype)


def init_generator_params(key, z_dim=10, im_dim=784, hidden_dim=128):
    """Deterministic PyTorch-style init. Linear weights stored as (in, out)."""
    dims = [z_dim, hidden_dim, hidden_dim * 2, hidden_dim * 4, hidden_dim * 8, im_dim]
    params = []
    for i in range(5):
        fan_in, fan_out = dims[i], dims[i + 1]
        key, kw, kb = jax.random.split(key, 3)
        bound = 1.0 / (fan_in ** 0.5)
        w = jax.random.uniform(kw, (fan_in, fan_out), jnp.float32, -bound, bound)
        b = jax.random.uniform(kb, (1, fan_out), jnp.float32, -bound, bound)
        layer = {"w": w, "b": b}
        if i < 4:  # blocks 0..3 have BatchNorm affine params
            layer["gamma"] = jnp.ones((1, fan_out), jnp.float32)
            layer["beta"] = jnp.zeros((1, fan_out), jnp.float32)
        params.append(layer)
    return params


def _round_up(x, m):
    return ((x + m - 1) // m) * m


@jax.jit
def generator_forward(noise, params):
    B = noise.shape[0]
    im_dim = params[4]["w"].shape[1]
    im_pad = _round_up(im_dim, 128)        # lane-dense output store

    # bf16 weights for the MXU path; BN affine & final bias stay f32.
    flat = [noise]
    for i in range(4):
        flat += [params[i]["w"].astype(jnp.bfloat16),
                 params[i]["gamma"], params[i]["beta"]]
    w5 = params[4]["w"].astype(jnp.bfloat16)
    b5 = params[4]["b"]
    if im_pad != im_dim:
        w5 = jnp.pad(w5, ((0, 0), (0, im_pad - im_dim)))
        b5 = jnp.pad(b5, ((0, 0), (0, im_pad - im_dim)))
    flat += [w5, b5]

    # advisory cost estimate for XLA scheduling
    layer_dims = [tuple(params[i]["w"].shape) for i in range(4)]
    layer_dims.append((params[4]["w"].shape[0], im_pad))
    flops = 2 * B * sum(k * n for k, n in layer_dims)
    transcendentals = sum(n for _, n in layer_dims[:4]) + B * im_pad
    bytes_accessed = (sum(int(a.size) * a.dtype.itemsize for a in flat)
                      + B * im_pad * 4)

    vmem = pl.BlockSpec(memory_space=pltpu.MemorySpace.VMEM)
    out = pl.pallas_call(
        generator_kernel,
        out_shape=jax.ShapeDtypeStruct((B, im_pad), jnp.float32),
        in_specs=[vmem] * len(flat),
        out_specs=vmem,
        compiler_params=pltpu.CompilerParams(vmem_limit_bytes=32 << 20),
        cost_estimate=pl.CostEstimate(flops=flops,
                                      transcendentals=transcendentals,
                                      bytes_accessed=bytes_accessed),
    )(*flat)
    return out[:, :im_dim]


def generator_reference(noise, params):
    """Pure-JAX f32 reference (keeps the bias; BN cancels it exactly)."""
    h = noise.astype(jnp.float32)
    for i in range(4):
        y = h @ params[i]["w"] + params[i]["b"]
        mean = jnp.mean(y, axis=0, keepdims=True)
        var = jnp.mean((y - mean) ** 2, axis=0, keepdims=True)
        y = (y - mean) / jnp.sqrt(var + BN_EPS)
        y = y * params[i]["gamma"] + params[i]["beta"]
        h = jnp.maximum(y, 0.0)
    logits = h @ params[4]["w"] + params[4]["b"]
    return jax.nn.sigmoid(logits)


if __name__ == "__main__":
    # Small feature dims; batch 128 so the MXU systolic array is actually fed.
    Z_DIM, IM_DIM, HIDDEN_DIM, BATCH = 8, 64, 32, 128

    key = jax.random.PRNGKey(0)
    key, k_noise = jax.random.split(key)
    params = init_generator_params(key, z_dim=Z_DIM, im_dim=IM_DIM,
                                   hidden_dim=HIDDEN_DIM)
    noise = jax.random.normal(k_noise, (BATCH, Z_DIM), jnp.float32)

    out = jax.block_until_ready(generator_forward(noise, params))
    ref = generator_reference(noise, params)

    assert out.shape == (BATCH, IM_DIM)
    # bf16 MXU weights -> loosened absolute tolerance on sigmoid outputs.
    assert jnp.allclose(out, ref, atol=2e-2, rtol=0.0), "mismatch vs reference"

    print("KERNEL_OK")
</pallas_src>

<mosaic_0001>
module attributes {stable_mosaic.version = 11 : i64} {
  func.func @generator_kernel(%arg0: memref<128x8xf32, #tpu.memory_space<vmem>>, %arg1: memref<8x32xbf16, #tpu.memory_space<vmem>>, %arg2: memref<1x32xf32, #tpu.memory_space<vmem>>, %arg3: memref<1x32xf32, #tpu.memory_space<vmem>>, %arg4: memref<32x64xbf16, #tpu.memory_space<vmem>>, %arg5: memref<1x64xf32, #tpu.memory_space<vmem>>, %arg6: memref<1x64xf32, #tpu.memory_space<vmem>>, %arg7: memref<64x128xbf16, #tpu.memory_space<vmem>>, %arg8: memref<1x128xf32, #tpu.memory_space<vmem>>, %arg9: memref<1x128xf32, #tpu.memory_space<vmem>>, %arg10: memref<128x256xbf16, #tpu.memory_space<vmem>>, %arg11: memref<1x256xf32, #tpu.memory_space<vmem>>, %arg12: memref<1x256xf32, #tpu.memory_space<vmem>>, %arg13: memref<256x128xbf16, #tpu.memory_space<vmem>>, %arg14: memref<1x128xf32, #tpu.memory_space<vmem>>, %arg15: memref<128x128xf32, #tpu.memory_space<vmem>>) attributes {dimension_semantics = [], scalar_prefetch = 0 : i64, scratch_operands = 0 : i64, tpu.core_type = #tpu.core_type<tc>} {
    %c0 = arith.constant 0 : index
    %c0_0 = arith.constant 0 : index
    %0 = vector.load %arg0[%c0, %c0_0] : memref<128x8xf32, #tpu.memory_space<vmem>>, vector<128x8xf32>
    %1 = arith.truncf %0 : vector<128x8xf32> to vector<128x8xbf16>
    %c0_1 = arith.constant 0 : index
    %c0_2 = arith.constant 0 : index
    %2 = vector.load %arg1[%c0_1, %c0_2] : memref<8x32xbf16, #tpu.memory_space<vmem>>, vector<8x32xbf16>
    %cst = arith.constant dense<0.000000e+00> : vector<128x32xf32>
    %3 = tpu.matmul %1, %2, %cst {dimension_numbers = #tpu.dot_dimension_numbers<[1], [0], [0], [1], [0, 0, 1, 1], [], []>} : vector<128x8xbf16>, vector<8x32xbf16>, vector<128x32xf32> -> vector<128x32xf32>
    %cst_3 = arith.constant dense<0.000000e+00> : vector<32xf32>
    %4 = vector.multi_reduction <add>, %3, %cst_3 [0] : vector<128x32xf32> to vector<32xf32>
    %5 = vector.shape_cast %4 : vector<32xf32> to vector<1x32xf32>
    %6 = arith.mulf %3, %3 : vector<128x32xf32>
    %cst_4 = arith.constant dense<0.000000e+00> : vector<32xf32>
    %7 = vector.multi_reduction <add>, %6, %cst_4 [0] : vector<128x32xf32> to vector<32xf32>
    %8 = vector.shape_cast %7 : vector<32xf32> to vector<1x32xf32>
    %cst_5 = arith.constant 7.812500e-03 : f32
    %9 = vector.broadcast %cst_5 : f32 to vector<1x32xf32>
    %10 = arith.mulf %5, %9 : vector<1x32xf32>
    %cst_6 = arith.constant 7.812500e-03 : f32
    %11 = vector.broadcast %cst_6 : f32 to vector<1x32xf32>
    %12 = arith.mulf %8, %11 : vector<1x32xf32>
    %13 = arith.mulf %10, %10 : vector<1x32xf32>
    %14 = arith.subf %12, %13 : vector<1x32xf32>
    %cst_7 = arith.constant 0.000000e+00 : f32
    %15 = vector.broadcast %cst_7 : f32 to vector<1x32xf32>
    %16 = arith.maximumf %14, %15 : vector<1x32xf32>
    %c0_8 = arith.constant 0 : index
    %c0_9 = arith.constant 0 : index
    %17 = vector.load %arg2[%c0_8, %c0_9] : memref<1x32xf32, #tpu.memory_space<vmem>>, vector<1x32xf32>
    %cst_10 = arith.constant 9.99999974E-6 : f32
    %18 = vector.broadcast %cst_10 : f32 to vector<1x32xf32>
    %19 = arith.addf %16, %18 : vector<1x32xf32>
    %20 = math.rsqrt %19 : vector<1x32xf32>
    %21 = arith.mulf %17, %20 : vector<1x32xf32>
    %c0_11 = arith.constant 0 : index
    %c0_12 = arith.constant 0 : index
    %22 = vector.load %arg3[%c0_11, %c0_12] : memref<1x32xf32, #tpu.memory_space<vmem>>, vector<1x32xf32>
    %23 = arith.mulf %10, %21 : vector<1x32xf32>
    %24 = arith.subf %22, %23 : vector<1x32xf32>
    %25 = vector.broadcast %21 : vector<1x32xf32> to vector<128x32xf32>
    %26 = arith.mulf %3, %25 : vector<128x32xf32>
    %27 = vector.broadcast %24 : vector<1x32xf32> to vector<128x32xf32>
    %28 = arith.addf %26, %27 : vector<128x32xf32>
    %cst_13 = arith.constant 0.000000e+00 : f32
    %29 = vector.broadcast %cst_13 : f32 to vector<128x32xf32>
    %30 = arith.maximumf %28, %29 : vector<128x32xf32>
    %31 = arith.truncf %30 : vector<128x32xf32> to vector<128x32xbf16>
    %c0_14 = arith.constant 0 : index
    %c0_15 = arith.constant 0 : index
    %32 = vector.load %arg4[%c0_14, %c0_15] : memref<32x64xbf16, #tpu.memory_space<vmem>>, vector<32x64xbf16>
    %cst_16 = arith.constant dense<0.000000e+00> : vector<128x64xf32>
    %33 = tpu.matmul %31, %32, %cst_16 {dimension_numbers = #tpu.dot_dimension_numbers<[1], [0], [0], [1], [0, 0, 1, 1], [], []>} : vector<128x32xbf16>, vector<32x64xbf16>, vector<128x64xf32> -> vector<128x64xf32>
    %cst_17 = arith.constant dense<0.000000e+00> : vector<64xf32>
    %34 = vector.multi_reduction <add>, %33, %cst_17 [0] : vector<128x64xf32> to vector<64xf32>
    %35 = vector.shape_cast %34 : vector<64xf32> to vector<1x64xf32>
    %36 = arith.mulf %33, %33 : vector<128x64xf32>
    %cst_18 = arith.constant dense<0.000000e+00> : vector<64xf32>
    %37 = vector.multi_reduction <add>, %36, %cst_18 [0] : vector<128x64xf32> to vector<64xf32>
    %38 = vector.shape_cast %37 : vector<64xf32> to vector<1x64xf32>
    %cst_19 = arith.constant 7.812500e-03 : f32
    %39 = vector.broadcast %cst_19 : f32 to vector<1x64xf32>
    %40 = arith.mulf %35, %39 : vector<1x64xf32>
    %cst_20 = arith.constant 7.812500e-03 : f32
    %41 = vector.broadcast %cst_20 : f32 to vector<1x64xf32>
    %42 = arith.mulf %38, %41 : vector<1x64xf32>
    %43 = arith.mulf %40, %40 : vector<1x64xf32>
    %44 = arith.subf %42, %43 : vector<1x64xf32>
    %cst_21 = arith.constant 0.000000e+00 : f32
    %45 = vector.broadcast %cst_21 : f32 to vector<1x64xf32>
    %46 = arith.maximumf %44, %45 : vector<1x64xf32>
    %c0_22 = arith.constant 0 : index
    %c0_23 = arith.constant 0 : index
    %47 = vector.load %arg5[%c0_22, %c0_23] : memref<1x64xf32, #tpu.memory_space<vmem>>, vector<1x64xf32>
    %cst_24 = arith.constant 9.99999974E-6 : f32
    %48 = vector.broadcast %cst_24 : f32 to vector<1x64xf32>
    %49 = arith.addf %46, %48 : vector<1x64xf32>
    %50 = math.rsqrt %49 : vector<1x64xf32>
    %51 = arith.mulf %47, %50 : vector<1x64xf32>
    %c0_25 = arith.constant 0 : index
    %c0_26 = arith.constant 0 : index
    %52 = vector.load %arg6[%c0_25, %c0_26] : memref<1x64xf32, #tpu.memory_space<vmem>>, vector<1x64xf32>
    %53 = arith.mulf %40, %51 : vector<1x64xf32>
    %54 = arith.subf %52, %53 : vector<1x64xf32>
    %55 = vector.broadcast %51 : vector<1x64xf32> to vector<128x64xf32>
    %56 = arith.mulf %33, %55 : vector<128x64xf32>
    %57 = vector.broadcast %54 : vector<1x64xf32> to vector<128x64xf32>
    %58 = arith.addf %56, %57 : vector<128x64xf32>
    %cst_27 = arith.constant 0.000000e+00 : f32
    %59 = vector.broadcast %cst_27 : f32 to vector<128x64xf32>
    %60 = arith.maximumf %58, %59 : vector<128x64xf32>
    %61 = arith.truncf %60 : vector<128x64xf32> to vector<128x64xbf16>
    %c0_28 = arith.constant 0 : index
    %c0_29 = arith.constant 0 : index
    %62 = vector.load %arg7[%c0_28, %c0_29] : memref<64x128xbf16, #tpu.memory_space<vmem>>, vector<64x128xbf16>
    %cst_30 = arith.constant dense<0.000000e+00> : vector<128x128xf32>
    %63 = tpu.matmul %61, %62, %cst_30 {dimension_numbers = #tpu.dot_dimension_numbers<[1], [0], [0], [1], [0, 0, 1, 1], [], []>} : vector<128x64xbf16>, vector<64x128xbf16>, vector<128x128xf32> -> vector<128x128xf32>
    %cst_31 = arith.constant dense<0.000000e+00> : vector<128xf32>
    %64 = vector.multi_reduction <add>, %63, %cst_31 [0] : vector<128x128xf32> to vector<128xf32>
    %65 = vector.shape_cast %64 : vector<128xf32> to vector<1x128xf32>
    %66 = arith.mulf %63, %63 : vector<128x128xf32>
    %cst_32 = arith.constant dense<0.000000e+00> : vector<128xf32>
    %67 = vector.multi_reduction <add>, %66, %cst_32 [0] : vector<128x128xf32> to vector<128xf32>
    %68 = vector.shape_cast %67 : vector<128xf32> to vector<1x128xf32>
    %cst_33 = arith.constant 7.812500e-03 : f32
    %69 = vector.broadcast %cst_33 : f32 to vector<1x128xf32>
    %70 = arith.mulf %65, %69 : vector<1x128xf32>
    %cst_34 = arith.constant 7.812500e-03 : f32
    %71 = vector.broadcast %cst_34 : f32 to vector<1x128xf32>
    %72 = arith.mulf %68, %71 : vector<1x128xf32>
    %73 = arith.mulf %70, %70 : vector<1x128xf32>
    %74 = arith.subf %72, %73 : vector<1x128xf32>
    %cst_35 = arith.constant 0.000000e+00 : f32
    %75 = vector.broadcast %cst_35 : f32 to vector<1x128xf32>
    %76 = arith.maximumf %74, %75 : vector<1x128xf32>
    %c0_36 = arith.constant 0 : index
    %c0_37 = arith.constant 0 : index
    %77 = vector.load %arg8[%c0_36, %c0_37] : memref<1x128xf32, #tpu.memory_space<vmem>>, vector<1x128xf32>
    %cst_38 = arith.constant 9.99999974E-6 : f32
    %78 = vector.broadcast %cst_38 : f32 to vector<1x128xf32>
    %79 = arith.addf %76, %78 : vector<1x128xf32>
    %80 = math.rsqrt %79 : vector<1x128xf32>
    %81 = arith.mulf %77, %80 : vector<1x128xf32>
    %c0_39 = arith.constant 0 : index
    %c0_40 = arith.constant 0 : index
    %82 = vector.load %arg9[%c0_39, %c0_40] : memref<1x128xf32, #tpu.memory_space<vmem>>, vector<1x128xf32>
    %83 = arith.mulf %70, %81 : vector<1x128xf32>
    %84 = arith.subf %82, %83 : vector<1x128xf32>
    %85 = vector.broadcast %81 : vector<1x128xf32> to vector<128x128xf32>
    %86 = arith.mulf %63, %85 : vector<128x128xf32>
    %87 = vector.broadcast %84 : vector<1x128xf32> to vector<128x128xf32>
    %88 = arith.addf %86, %87 : vector<128x128xf32>
    %cst_41 = arith.constant 0.000000e+00 : f32
    %89 = vector.broadcast %cst_41 : f32 to vector<128x128xf32>
    %90 = arith.maximumf %88, %89 : vector<128x128xf32>
    %91 = arith.truncf %90 : vector<128x128xf32> to vector<128x128xbf16>
    %c0_42 = arith.constant 0 : index
    %c0_43 = arith.constant 0 : index
    %92 = vector.load %arg10[%c0_42, %c0_43] : memref<128x256xbf16, #tpu.memory_space<vmem>>, vector<128x256xbf16>
    %cst_44 = arith.constant dense<0.000000e+00> : vector<128x256xf32>
    %93 = tpu.matmul %91, %92, %cst_44 {dimension_numbers = #tpu.dot_dimension_numbers<[1], [0], [0], [1], [0, 0, 1, 1], [], []>} : vector<128x128xbf16>, vector<128x256xbf16>, vector<128x256xf32> -> vector<128x256xf32>
    %cst_45 = arith.constant dense<0.000000e+00> : vector<256xf32>
    %94 = vector.multi_reduction <add>, %93, %cst_45 [0] : vector<128x256xf32> to vector<256xf32>
    %95 = vector.shape_cast %94 : vector<256xf32> to vector<1x256xf32>
    %96 = arith.mulf %93, %93 : vector<128x256xf32>
    %cst_46 = arith.constant dense<0.000000e+00> : vector<256xf32>
    %97 = vector.multi_reduction <add>, %96, %cst_46 [0] : vector<128x256xf32> to vector<256xf32>
    %98 = vector.shape_cast %97 : vector<256xf32> to vector<1x256xf32>
    %cst_47 = arith.constant 7.812500e-03 : f32
    %99 = vector.broadcast %cst_47 : f32 to vector<1x256xf32>
    %100 = arith.mulf %95, %99 : vector<1x256xf32>
    %cst_48 = arith.constant 7.812500e-03 : f32
    %101 = vector.broadcast %cst_48 : f32 to vector<1x256xf32>
    %102 = arith.mulf %98, %101 : vector<1x256xf32>
    %103 = arith.mulf %100, %100 : vector<1x256xf32>
    %104 = arith.subf %102, %103 : vector<1x256xf32>
    %cst_49 = arith.constant 0.000000e+00 : f32
    %105 = vector.broadcast %cst_49 : f32 to vector<1x256xf32>
    %106 = arith.maximumf %104, %105 : vector<1x256xf32>
    %c0_50 = arith.constant 0 : index
    %c0_51 = arith.constant 0 : index
    %107 = vector.load %arg11[%c0_50, %c0_51] : memref<1x256xf32, #tpu.memory_space<vmem>>, vector<1x256xf32>
    %cst_52 = arith.constant 9.99999974E-6 : f32
    %108 = vector.broadcast %cst_52 : f32 to vector<1x256xf32>
    %109 = arith.addf %106, %108 : vector<1x256xf32>
    %110 = math.rsqrt %109 : vector<1x256xf32>
    %111 = arith.mulf %107, %110 : vector<1x256xf32>
    %c0_53 = arith.constant 0 : index
    %c0_54 = arith.constant 0 : index
    %112 = vector.load %arg12[%c0_53, %c0_54] : memref<1x256xf32, #tpu.memory_space<vmem>>, vector<1x256xf32>
    %113 = arith.mulf %100, %111 : vector<1x256xf32>
    %114 = arith.subf %112, %113 : vector<1x256xf32>
    %115 = vector.broadcast %111 : vector<1x256xf32> to vector<128x256xf32>
    %116 = arith.mulf %93, %115 : vector<128x256xf32>
    %117 = vector.broadcast %114 : vector<1x256xf32> to vector<128x256xf32>
    %118 = arith.addf %116, %117 : vector<128x256xf32>
    %cst_55 = arith.constant 0.000000e+00 : f32
    %119 = vector.broadcast %cst_55 : f32 to vector<128x256xf32>
    %120 = arith.maximumf %118, %119 : vector<128x256xf32>
    %121 = arith.truncf %120 : vector<128x256xf32> to vector<128x256xbf16>
    %c0_56 = arith.constant 0 : index
    %c0_57 = arith.constant 0 : index
    %122 = vector.load %arg13[%c0_56, %c0_57] : memref<256x128xbf16, #tpu.memory_space<vmem>>, vector<256x128xbf16>
    %cst_58 = arith.constant dense<0.000000e+00> : vector<128x128xf32>
    %123 = tpu.matmul %121, %122, %cst_58 {dimension_numbers = #tpu.dot_dimension_numbers<[1], [0], [0], [1], [0, 0, 1, 1], [], []>} : vector<128x256xbf16>, vector<256x128xbf16>, vector<128x128xf32> -> vector<128x128xf32>
    %c0_59 = arith.constant 0 : index
    %c0_60 = arith.constant 0 : index
    %124 = vector.load %arg14[%c0_59, %c0_60] : memref<1x128xf32, #tpu.memory_space<vmem>>, vector<1x128xf32>
    %125 = vector.broadcast %124 : vector<1x128xf32> to vector<128x128xf32>
    %126 = arith.addf %123, %125 : vector<128x128xf32>
    %127 = arith.negf %126 : vector<128x128xf32>
    %128 = math.exp %127 : vector<128x128xf32>
    %cst_61 = arith.constant 1.000000e+00 : f32
    %129 = vector.broadcast %cst_61 : f32 to vector<128x128xf32>
    %130 = arith.addf %129, %128 : vector<128x128xf32>
    %131 = arith.divf %129, %130 : vector<128x128xf32>
    %c0_62 = arith.constant 0 : index
    %c0_63 = arith.constant 0 : index
    %132 = vector.load %arg15[%c0_62, %c0_63] : memref<128x128xf32, #tpu.memory_space<vmem>>, vector<128x128xf32>
    tpu.vector_store %arg15[%c0_62, %c0_63], %131 {strides = array<i32>} : memref<128x128xf32, #tpu.memory_space<vmem>>, vector<128x128xf32>,
    return
  }
}

</mosaic_0001>

<bundles_post_ra>
// kernel: generator_forward.1
= control target key start
LH: loop header
LB: loop body
LE: loop exit
PB: predicated region body
PF: predicated region fallthrough
CT: control target
= control target key end

     0   :  { %vm101_vm0 = vcmask 1043456   ;;  %vm76_vm1 = vcmask 64512   ;;  %vm154_vm2 = vcmask 261120   ;;  %vm417_vm6 = vcmask 523264   ;;  %s3227_s1 = inlined_call_operand.vmem [shape: bf16[8,32], index: 1, kind: input, shape index: {}]   ;;  %s3228_s0 = inlined_call_operand.vmem [shape: f32[128,8], index: 0, kind: input, shape index: {}]   ;;  %s3229_s4 = inlined_call_operand.vmem [shape: bf16[32,64], index: 4, kind: input, shape index: {}]   ;;  %s3230_s2 = inlined_call_operand.vmem [shape: f32[1,32], index: 2, kind: input, shape index: {}]   ;;  %s3231_s3 = inlined_call_operand.vmem [shape: f32[1,32], index: 3, kind: input, shape index: {}]   ;;  %s3232_s7 = inlined_call_operand.vmem [shape: bf16[64,128], index: 7, kind: input, shape index: {}]   ;;  %s3233_s5 = inlined_call_operand.vmem [shape: f32[1,64], index: 5, kind: input, shape index: {}]   ;;  %s3234_s6 = inlined_call_operand.vmem [shape: f32[1,64], index: 6, kind: input, shape index: {}]   ;;  %s3235_s10 = inlined_call_operand.vmem [shape: bf16[128,256], index: 10, kind: input, shape index: {}]   ;;  %s3236_s8 = inlined_call_operand.vmem [shape: f32[1,128], index: 8, kind: input, shape index: {}]   ;;  %s3237_s9 = inlined_call_operand.vmem [shape: f32[1,128], index: 9, kind: input, shape index: {}]   ;;  %s3238_s13 = inlined_call_operand.vmem [shape: bf16[256,128], index: 13, kind: input, shape index: {}]   ;;  %s3239_s11 = inlined_call_operand.vmem [shape: f32[1,256], index: 11, kind: input, shape index: {}]   ;;  %s3240_s12 = inlined_call_operand.vmem [shape: f32[1,256], index: 12, kind: input, shape index: {}]   ;;  %s3241_s14 = inlined_call_operand.vmem [shape: f32[1,128], index: 14, kind: input, shape index: {}]   ;;  %s3242_s15 = inlined_call_operand.vmem [shape: f32[128,128], index: 15, kind: output, shape index: {}]  }
   0x1   :  { %v75_v0 = vld [vmem:[%s3227_s1] sm:$0xf]  ;;  %v52_v2 = vld [vmem:[%s3228_s0 + $0x8] sm:$0xff]  ;;  %v53_v5 = vld [vmem:[%s3228_s0 + $0x10] sm:$0xff] }
   0x2   :  { %v51_v1 = vld [vmem:[%s3228_s0] sm:$0xff]  ;;  %v103_v3 = vsel %vm101_vm0, %v75_v0, 0  ;;  %v54_v6 = vld [vmem:[%s3228_s0 + $0x18] sm:$0xff]  ;;  %v56_v9 = vld [vmem:[%s3228_s0 + $0x28] sm:$0xff] }
   0x3   :  { %v67_v4 = vpack.c.bf16 %v52_v2, %v51_v1  ;;  %112 = vmatpush.bf16.msra.mxu0 %v103_v3  ;;  %2102 = vmatpush.bf16.msra.mxu2 %v103_v3  ;;  %v68_v7 = vpack.c.bf16 %v54_v6, %v53_v5  ;;  %v55_v8 = vld [vmem:[%s3228_s0 + $0x20] sm:$0xff]  ;;  %v57_v11 = vld [vmem:[%s3228_s0 + $0x30] sm:$0xff]  ;;  %v58_v12 = vld [vmem:[%s3228_s0 + $0x38] sm:$0xff] }
   0x4   :  { %v69_v10 = vpack.c.bf16 %v56_v9, %v55_v8  ;;  %v70_v13 = vpack.c.bf16 %v58_v12, %v57_v11  ;;  %v65_v14 = vld [vmem:[%s3228_s0 + $0x70] sm:$0xff]  ;;  %v66_v15 = vld [vmem:[%s3228_s0 + $0x78] sm:$0xff]  ;;  %v59_v17 = vld [vmem:[%s3228_s0 + $0x40] sm:$0xff] }
   0x5   :  { %v74_v16 = vpack.c.bf16 %v66_v15, %v65_v14  ;;  %v60_v18 = vld [vmem:[%s3228_s0 + $0x48] sm:$0xff]  ;;  %v61_v20 = vld [vmem:[%s3228_s0 + $0x50] sm:$0xff]  ;;  %v62_v21 = vld [vmem:[%s3228_s0 + $0x58] sm:$0xff] }
   0x6   :  { %1872 = vmatmul.msk.bf16.vlgmr.msra.gmra.mxu0 %vm76_vm1, %v67_v4  ;;  %v71_v19 = vpack.c.bf16 %v60_v18, %v59_v17  ;;  %v72_v22 = vpack.c.bf16 %v62_v21, %v61_v20  ;;  %v63_v23 = vld [vmem:[%s3228_s0 + $0x60] sm:$0xff]  ;;  %v64_v24 = vld [vmem:[%s3228_s0 + $0x68] sm:$0xff] }
   0x7   :  { %1879 = vmatmul.msk.bf16.vlgmr.msra.gmra.mxu2 %vm76_vm1, %v74_v16  ;;  %v73_v25 = vpack.c.bf16 %v64_v24, %v63_v23 }
  0x16   :  { %1873 = vmatmul.msk.bf16.gmra.mxu0 %vm76_vm1, %v68_v7 }
  0x26   :  { %1874 = vmatmul.msk.bf16.gmra.mxu0 %vm76_vm1, %v69_v10 }
  0x36   :  { %1875 = vmatmul.msk.bf16.gmra.mxu0 %vm76_vm1, %v70_v13 }
  0x46   :  { %1876 = vmatmul.msk.bf16.gmra.mxu0 %vm76_vm1, %v71_v19 }
  0x56   :  { %1877 = vmatmul.msk.bf16.gmra.mxu0 %vm76_vm1, %v72_v22 }
  0x66   :  { %1878 = vmatmul.msk.bf16.gmra.mxu0 %vm76_vm1, %v73_v25 }
  0x83   :  { %v2323_v26 = vpop.f32.mrf.mxu0 }
  0x84   :  { %v192_v37 = vmul.f32 %v2323_v26, %v2323_v26  ;;  %v155_v41 = vsel %vm154_vm2, %v2323_v26, 0.0 }
  0x86   :  { %v208_v46 = vsel %vm154_vm2, %v192_v37, 0.0 }
  0x8a   :  { %v2393_v14 = vpop.f32.mrf.mxu2 }
  0x8b   :  { %v2325_v27 = vpop.f32.mrf.mxu0 }
  0x8c   :  { %v193_v36 = vmul.f32 %v2325_v27, %v2325_v27  ;;  %v156_v38 = vsel %vm154_vm2, %v2325_v27, 0.0 }
  0x8d   :  { %v157_v45 = vadd.f32 %v156_v38, %v155_v41 }
  0x8e   :  { %v209_v42 = vsel %vm154_vm2, %v193_v36, 0.0 }
  0x8f   :  { %v210_v51 = vadd.f32 %v209_v42, %v208_v46 }
  0x93   :  { %v2327_v28 = vpop.f32.mrf.mxu0 }
  0x94   :  { %v194_v39 = vmul.f32 %v2327_v28, %v2327_v28  ;;  %v158_v43 = vsel %vm154_vm2, %v2327_v28, 0.0 }
  0x95   :  { %v159_v50 = vadd.f32 %v158_v43, %v157_v45 }
  0x96   :  { %v211_v47 = vsel %vm154_vm2, %v194_v39, 0.0 }
  0x97   :  { %v212_v55 = vadd.f32 %v211_v47, %v210_v51  ;;  %v206_v51 = vmul.f32 %v2393_v14, %v2393_v14 }
  0x9b   :  { %v2329_v29 = vpop.f32.mrf.mxu0 }
  0x9c   :  { %v195_v44 = vmul.f32 %v2329_v29, %v2329_v29  ;;  %v160_v48 = vsel %vm154_vm2, %v2329_v29, 0.0 }
  0x9d   :  { %v161_v56 = vadd.f32 %v160_v48, %v159_v50 }
  0x9e   :  { %v213_v52 = vsel %vm154_vm2, %v195_v44, 0.0 }
  0x9f   :  { %v214_v61 = vadd.f32 %v213_v52, %v212_v55 }
  0xa3   :  { %v2331_v30 = vpop.f32.mrf.mxu0 }
  0xa4   :  { %v196_v49 = vmul.f32 %v2331_v30, %v2331_v30  ;;  %v162_v53 = vsel %vm154_vm2, %v2331_v30, 0.0 }
  0xa5   :  { %v163_v60 = vadd.f32 %v162_v53, %v161_v56  ;;  %v182_v56 = vsel %vm154_vm2, %v2393_v14, 0.0 }
  0xa6   :  { %v215_v57 = vsel %vm154_vm2, %v196_v49, 0.0  ;;  %v2416_v49 = vpop.f32.mrf.mxu2 }
  0xa7   :  { %v216_v2 = vadd.f32 %v215_v57, %v214_v61  ;;  %v207_v57 = vmul.f32 %v2416_v49, %v2416_v49  ;;  %v235_v61 = vsel %vm154_vm2, %v206_v51, 0.0 }
  0xab   :  { %v2333_v31 = vpop.f32.mrf.mxu0 }
  0xac   :  { %v197_v54 = vmul.f32 %v2333_v31, %v2333_v31  ;;  %v164_v58 = vsel %vm154_vm2, %v2333_v31, 0.0 }
  0xad   :  { %v165_v3 = vadd.f32 %v164_v58, %v163_v60 }
  0xae   :  { %v217_v63 = vsel %vm154_vm2, %v197_v54, 0.0 }
  0xaf   :  { %v218_v8 = vadd.f32 %v217_v63, %v216_v2  ;;  %v184_v63 = vsel %vm154_vm2, %v2416_v49, 0.0  ;;  %v237_v2 = vsel %vm154_vm2, %v207_v57, 0.0 }
  0xb3   :  { %v2335_v32 = vpop.f32.mrf.mxu0 }
  0xb4   :  { %v198_v59 = vmul.f32 %v2335_v32, %v2335_v32  ;;  %v166_v0 = vsel %vm154_vm2, %v2335_v32, 0.0 }
  0xb5   :  { %v167_v7 = vadd.f32 %v166_v0, %v165_v3 }
  0xb6   :  { %v219_v4 = vsel %vm154_vm2, %v198_v59, 0.0 }
  0xb7   :  { %v220_v12 = vadd.f32 %v219_v4, %v218_v8 }
  0xbb   :  { %v2337_v33 = vpop.f32.mrf.mxu0 }
  0xbc   :  { %v199_v1 = vmul.f32 %v2337_v33, %v2337_v33  ;;  %v168_v5 = vsel %vm154_vm2, %v2337_v33, 0.0 }
  0xbd   :  { %v169_v13 = vadd.f32 %v168_v5, %v167_v7 }
  0xbe   :  { %v221_v9 = vsel %vm154_vm2, %v199_v1, 0.0 }
  0xbf   :  { %v222_v18 = vadd.f32 %v221_v9, %v220_v12 }
  0xc3   :  { %v2339_v34 = vpop.f32.mrf.mxu0 }
  0xc4   :  { %v200_v6 = vmul.f32 %v2339_v34, %v2339_v34  ;;  %v170_v10 = vsel %vm154_vm2, %v2339_v34, 0.0 }
  0xc5   :  { %v171_v19 = vadd.f32 %v170_v10, %v169_v13 }
  0xc6   :  { %v223_v15 = vsel %vm154_vm2, %v200_v6, 0.0 }
  0xc7   :  { %v224_v24 = vadd.f32 %v223_v15, %v222_v18  ;;  %v2065_v18 = vld [vmem:[%s3229_s4 + $0x8] sm:$0xff] }
  0xc8   :  { %374 = vmatpush.bf16.msra.mxu1 %v2065_v18  ;;  %2103 = vmatpush.bf16.msrb.mxu2 %v2065_v18 }
  0xcb   :  { %v2341_v35 = vpop.f32.mrf.mxu0 }
  0xcc   :  { %v201_v11 = vmul.f32 %v2341_v35, %v2341_v35  ;;  %v172_v16 = vsel %vm154_vm2, %v2341_v35, 0.0 }
  0xcd   :  { %v173_v25 = vadd.f32 %v172_v16, %v171_v19 }
  0xce   :  { %v225_v21 = vsel %vm154_vm2, %v201_v11, 0.0 }
  0xcf   :  { %v226_v39 = vadd.f32 %v225_v21, %v224_v24 }
  0xd3   :  { %v2351_v40 = vpop.f32.mrf.mxu0 }
  0xd4   :  { %v202_v17 = vmul.f32 %v2351_v40, %v2351_v40  ;;  %v174_v22 = vsel %vm154_vm2, %v2351_v40, 0.0 }
  0xd5   :  { %v175_v41 = vadd.f32 %v174_v22, %v173_v25 }
  0xd6   :  { %v227_v36 = vsel %vm154_vm2, %v202_v17, 0.0 }
  0xd7   :  { %v228_v44 = vadd.f32 %v227_v36, %v226_v39 }
  0xdb   :  { %v2376_v62 = vpop.f32.mrf.mxu0 }
  0xdc   :  { %v203_v23 = vmul.f32 %v2376_v62, %v2376_v62  ;;  %v176_v37 = vsel %vm154_vm2, %v2376_v62, 0.0 }
  0xdd   :  { %v177_v45 = vadd.f32 %v176_v37, %v175_v41 }
  0xde   :  { %v229_v42 = vsel %vm154_vm2, %v203_v23, 0.0  ;;  %v2064_v23 = vld [vmem:[%s3229_s4] sm:$0xff] }
  0xdf   :  { %v230_v47 = vadd.f32 %v229_v42, %v228_v44  ;;  %375 = vmatpush.bf16.msra.mxu1 %v2064_v23  ;;  %2104 = vmatpush.bf16.msrb.mxu2 %v2064_v23  ;;  %v250_v42 = vld [vmem:[%s3230_s2] sm:$0x1] }
  0xe3   :  { %v2400_v20 = vpop.f32.mrf.mxu0 }
  0xe4   :  { %v204_v38 = vmul.f32 %v2400_v20, %v2400_v20  ;;  %v178_v43 = vsel %vm154_vm2, %v2400_v20, 0.0 }
  0xe5   :  { %v179_v48 = vadd.f32 %v178_v43, %v177_v45 }
  0xe6   :  { %v231_v46 = vsel %vm154_vm2, %v204_v38, 0.0 }
  0xe7   :  { %v232_v54 = vadd.f32 %v231_v46, %v230_v47  ;;  %v263_v46 = vld [vmem:[%s3231_s3] sm:$0x1] }
  0xeb   :  { %v146_v50 = vpop.f32.mrf.mxu0 }
  0xec   :  { %v180_v52 = vsel %vm154_vm2, %v146_v50, 0.0  ;;  %v205_v53 = vmul.f32 %v146_v50, %v146_v50 }
  0xed   :  { %v181_v55 = vadd.f32 %v180_v52, %v179_v48 }
  0xee   :  { %v233_v58 = vsel %vm154_vm2, %v205_v53, 0.0 }
  0xef   :  { %v183_v59 = vadd.f32 %v182_v56, %v181_v55  ;;  %v234_v60 = vadd.f32 %v233_v58, %v232_v54 }
  0xf1   :  { %v185_v0 = vadd.f32 %v184_v63, %v183_v59  ;;  %v236_v1 = vadd.f32 %v235_v61, %v234_v60 }
  0xf3   :  { %v186_v3 = vrot.slane %v185_v0, 4  ;;  %v238_v4 = vadd.f32 %v237_v2, %v236_v1 }
  0xf5   :  { %v187_v5 = vadd.f32 %v186_v3, %v185_v0  ;;  %v239_v6 = vrot.slane %v238_v4, 4 }
  0xf7   :  { %v188_v7 = vrot.slane %v187_v5, 2  ;;  %v240_v8 = vadd.f32 %v239_v6, %v238_v4 }
  0xf9   :  { %v189_v9 = vadd.f32 %v188_v7, %v187_v5  ;;  %v241_v10 = vrot.slane %v240_v8, 2 }
  0xfb   :  { %v190_v11 = vrot.slane %v189_v9, 1  ;;  %v242_v12 = vadd.f32 %v241_v10, %v240_v8 }
  0xfd   :  { %v191_v13 = vadd.f32 %v190_v11, %v189_v9  ;;  %v243_v15 = vrot.slane %v242_v12, 1 }
  0xff   :  { %v244_v16 = vadd.f32 %v243_v15, %v242_v12  ;;  %v245_v17 = vmul.f32 0.0078125, %v191_v13 }
 0x101   :  { %v246_v19 = vmul.f32 0.0078125, %v244_v16  ;;  %v247_v21 = vmul.f32 %v245_v17, %v245_v17 }
 0x103   :  { %v248_v22 = vsub.f32 %v246_v19, %v247_v21 }
 0x105   :  { %v249_v24 = vmax.f32 %v248_v22, 0.0 }
 0x107   :  { %v251_v25 = vadd.f32 1e-05, %v249_v24 }
 0x109   :  { %2110 = vrsqrt.f32 %v251_v25  ;;  %vm258_vm4 = vweird.f32 %v251_v25 }
 0x10f   :  { %v2111_v36 = vpop.eup %2110 }
 0x110   :  { %v253_v37 = vmul.f32 %v2111_v36, %v251_v25  ;;  %vm259_vm3 = vweird.f32 %v2111_v36 }
 0x111   :  { %vm260_vm5 = vmor %vm258_vm4, %vm259_vm3 }
 0x112   :  { %v254_v38 = vmul.f32 %v2111_v36, %v253_v37 }
 0x114   :  { %v255_v39 = vmul.f32 0.5, %v254_v38 }
 0x116   :  { %v256_v41 = vsub.f32 1.5, %v255_v39 }
 0x118   :  { %v257_v43 = vmul.f32 %v2111_v36, %v256_v41 }
 0x11a   :  { %v261_v44 = vsel %vm260_vm5, %v2111_v36, %v257_v43 }
 0x11b   :  { %v262_v45 = vmul.f32 %v261_v44, %v250_v42 }
 0x11d   :  { %v264_v47 = vmul.f32 %v262_v45, %v245_v17  ;;  %v267_v48 = vperm.slane %v262_v45, 0 }
 0x11f   :  { %v265_v51 = vsub.f32 %v263_v46, %v264_v47  ;;  %v282_v52 = vmul.f32 %v267_v48, %v146_v50  ;;  %v269_v54 = vmul.f32 %v267_v48, %v2323_v26  ;;  %v270_v55 = vmul.f32 %v267_v48, %v2325_v27 }
 0x120   :  { %v281_v56 = vmul.f32 %v267_v48, %v2400_v20  ;;  %v277_v4 = vmul.f32 %v267_v48, %v2339_v34  ;;  %v278_v50 = vmul.f32 %v267_v48, %v2341_v35  ;;  %v279_v20 = vmul.f32 %v267_v48, %v2351_v40 }
 0x121   :  { %v286_v53 = vperm.slane %v265_v51, 0  ;;  %v280_v5 = vmul.f32 %v267_v48, %v2376_v62  ;;  %v271_v8 = vmul.f32 %v267_v48, %v2327_v28  ;;  %v272_v34 = vmul.f32 %v267_v48, %v2329_v29 }
 0x122   :  { %v283_v35 = vmul.f32 %v267_v48, %v2393_v14  ;;  %v284_v11 = vmul.f32 %v267_v48, %v2416_v49  ;;  %v273_v29 = vmul.f32 %v267_v48, %v2331_v30  ;;  %v274_v14 = vmul.f32 %v267_v48, %v2333_v31 }
 0x123   :  { %v301_v57 = vadd.f32 %v286_v53, %v282_v52  ;;  %v288_v58 = vadd.f32 %v286_v53, %v269_v54  ;;  %v289_v59 = vadd.f32 %v286_v53, %v270_v55  ;;  %v300_v60 = vadd.f32 %v286_v53, %v281_v56 }
 0x124   :  { %v296_v26 = vadd.f32 %v286_v53, %v277_v4  ;;  %v297_v27 = vadd.f32 %v286_v53, %v278_v50  ;;  %v298_v9 = vadd.f32 %v286_v53, %v279_v20  ;;  %v299_v10 = vadd.f32 %v286_v53, %v280_v5 }
 0x125   :  { %v317_v61 = vmax.f32 %v301_v57, 0.0  ;;  %v304_v63 = vmax.f32 %v288_v58, 0.0  ;;  %v305_v0 = vmax.f32 %v289_v59, 0.0  ;;  %v316_v1 = vmax.f32 %v300_v60, 0.0 }
 0x126   :  { %v312_v6 = vmax.f32 %v296_v26, 0.0  ;;  %v313_v7 = vmax.f32 %v297_v27, 0.0  ;;  %v314_v13 = vmax.f32 %v298_v9, 0.0  ;;  %v315_v15 = vmax.f32 %v299_v10, 0.0 }
 0x127   :  { %v320_v2 = vpack.c.bf16 %v305_v0, %v304_v63  ;;  %v326_v3 = vpack.c.bf16 %v317_v61, %v316_v1  ;;  %v290_v16 = vadd.f32 %v286_v53, %v271_v8  ;;  %v291_v17 = vadd.f32 %v286_v53, %v272_v34 }
 0x128   :  { %v324_v12 = vpack.c.bf16 %v313_v7, %v312_v6  ;;  %v302_v40 = vadd.f32 %v286_v53, %v283_v35  ;;  %v303_v18 = vadd.f32 %v286_v53, %v284_v11  ;;  %v325_v62 = vpack.c.bf16 %v315_v15, %v314_v13 }
 0x129   :  { %1888 = vmatmul.msk.bf16.vlgmr.msra.gmra.mxu1 %vm154_vm2, %v320_v2  ;;  %1894 = vmatmul.msk.bf16.vlgmr.msrb.gmra.mxu2 %vm154_vm2, %v326_v3  ;;  %v306_v19 = vmax.f32 %v290_v16, 0.0  ;;  %v307_v21 = vmax.f32 %v291_v17, 0.0  ;;  %v292_v49 = vadd.f32 %v286_v53, %v273_v29  ;;  %v293_v25 = vadd.f32 %v286_v53, %v274_v14 }
 0x12a   :  { %v318_v22 = vmax.f32 %v302_v40, 0.0  ;;  %v319_v28 = vmax.f32 %v303_v18, 0.0  ;;  %v275_v39 = vmul.f32 %v267_v48, %v2335_v32  ;;  %v276_v41 = vmul.f32 %v267_v48, %v2337_v33 }
 0x12b   :  { %v321_v23 = vpack.c.bf16 %v307_v21, %v306_v19  ;;  %v308_v36 = vmax.f32 %v292_v49, 0.0  ;;  %v309_v37 = vmax.f32 %v293_v25, 0.0 }
 0x12c   :  { %v327_v24 = vpack.c.bf16 %v319_v28, %v318_v22  ;;  %v294_v42 = vadd.f32 %v286_v53, %v275_v39  ;;  %v295_v43 = vadd.f32 %v286_v53, %v276_v41 }
 0x12d   :  { %v322_v38 = vpack.c.bf16 %v309_v37, %v308_v36 }
 0x12e   :  { %v310_v44 = vmax.f32 %v294_v42, 0.0  ;;  %v311_v45 = vmax.f32 %v295_v43, 0.0 }
 0x130   :  { %v323_v46 = vpack.c.bf16 %v311_v45, %v310_v44 }
 0x139   :  { %1889 = vmatmul.msk.bf16.gmra.mxu1 %vm154_vm2, %v321_v23  ;;  %1895 = vmatmul.msk.bf16.gmra.mxu2 %vm154_vm2, %v327_v24 }
 0x149   :  { %1890 = vmatmul.msk.bf16.gmra.mxu1 %vm154_vm2, %v322_v38 }
 0x159   :  { %1891 = vmatmul.msk.bf16.gmra.mxu1 %vm154_vm2, %v323_v46 }
 0x169   :  { %1892 = vmatmul.msk.bf16.gmra.mxu1 %vm154_vm2, %v324_v12 }
 0x179   :  { %1893 = vmatmul.msk.bf16.gmra.mxu1 %vm154_vm2, %v325_v62  ;;  %vm1183_vm2 = vcmask 1040384  }
 0x1a6   :  { %v2465_v30 = vpop.f32.mrf.mxu1 }
 0x1a7   :  { %v455_v56 = vmul.f32 %v2465_v30, %v2465_v30  ;;  %v418_v59 = vsel %vm417_vm6, %v2465_v30, 0.0 }
 0x1a9   :  { %v471_v1 = vsel %vm417_vm6, %v455_v56, 0.0 }
 0x1ac   :  { %v2481_v53 = vpop.f32.mrf.mxu2 }
 0x1ae   :  { %v2467_v31 = vpop.f32.mrf.mxu1 }
 0x1af   :  { %v456_v55 = vmul.f32 %v2467_v31, %v2467_v31  ;;  %v419_v57 = vsel %vm417_vm6, %v2467_v31, 0.0 }
 0x1b0   :  { %v420_v0 = vadd.f32 %v419_v57, %v418_v59 }
 0x1b1   :  { %v472_v60 = vsel %vm417_vm6, %v456_v55, 0.0 }
 0x1b2   :  { %v473_v27 = vadd.f32 %v472_v60, %v471_v1 }
 0x1b4   :  { %v2506_v50 = vpop.f32.mrf.mxu2 }
 0x1b5   :  { %v468_v1 = vmul.f32 %v2506_v50, %v2506_v50 }
 0x1b6   :  { %v2469_v47 = vpop.f32.mrf.mxu1 }
 0x1b7   :  { %v457_v58 = vmul.f32 %v2469_v47, %v2469_v47  ;;  %v421_v61 = vsel %vm417_vm6, %v2469_v47, 0.0 }
 0x1b8   :  { %v422_v26 = vadd.f32 %v421_v61, %v420_v0  ;;  %v441_v0 = vsel %vm417_vm6, %v2481_v53, 0.0 }
 0x1b9   :  { %v474_v2 = vsel %vm417_vm6, %v457_v58, 0.0  ;;  %v467_v58 = vmul.f32 %v2481_v53, %v2481_v53 }
 0x1ba   :  { %v475_v8 = vadd.f32 %v474_v2, %v473_v27 }
 0x1bb   :  { %v494_v27 = vsel %vm417_vm6, %v467_v58, 0.0 }
 0x1bc   :  { %v2537_v14 = vpop.f32.mrf.mxu2 }
 0x1be   :  { %v2471_v32 = vpop.f32.mrf.mxu1 }
 0x1bf   :  { %v458_v63 = vmul.f32 %v2471_v32, %v2471_v32  ;;  %v423_v3 = vsel %vm417_vm6, %v2471_v32, 0.0 }
 0x1c0   :  { %v424_v9 = vadd.f32 %v423_v3, %v422_v26 }
 0x1c1   :  { %v476_v5 = vsel %vm417_vm6, %v458_v63, 0.0 }
 0x1c2   :  { %v477_v12 = vadd.f32 %v476_v5, %v475_v8  ;;  %v443_v5 = vsel %vm417_vm6, %v2506_v50, 0.0 }
 0x1c4   :  { %v2561_v3 = vpop.f32.mrf.mxu2 }
 0x1c6   :  { %v2473_v33 = vpop.f32.mrf.mxu1 }
 0x1c7   :  { %v459_v4 = vmul.f32 %v2473_v33, %v2473_v33  ;;  %v425_v6 = vsel %vm417_vm6, %v2473_v33, 0.0 }
 0x1c8   :  { %v426_v11 = vadd.f32 %v425_v6, %v424_v9  ;;  %v469_v6 = vmul.f32 %v2537_v14, %v2537_v14  ;;  %v496_v9 = vsel %vm417_vm6, %v468_v1, 0.0 }
 0x1c9   :  { %v478_v10 = vsel %vm417_vm6, %v459_v4, 0.0 }
 0x1ca   :  { %v479_v17 = vadd.f32 %v478_v10, %v477_v12  ;;  %v445_v10 = vsel %vm417_vm6, %v2537_v14, 0.0  ;;  %v498_v12 = vsel %vm417_vm6, %v469_v6, 0.0 }
 0x1ce   :  { %v2475_v48 = vpop.f32.mrf.mxu1 }
 0x1cf   :  { %v460_v7 = vmul.f32 %v2475_v48, %v2475_v48  ;;  %v427_v34 = vsel %vm417_vm6, %v2475_v48, 0.0 }
 0x1d0   :  { %v428_v40 = vadd.f32 %v427_v34, %v426_v11  ;;  %v470_v34 = vmul.f32 %v2561_v3, %v2561_v3 }
 0x1d1   :  { %v480_v13 = vsel %vm417_vm6, %v460_v7, 0.0 }
 0x1d2   :  { %v481_v21 = vadd.f32 %v480_v13, %v479_v17  ;;  %v447_v13 = vsel %vm417_vm6, %v2561_v3, 0.0  ;;  %v500_v17 = vsel %vm417_vm6, %v470_v34, 0.0 }
 0x1d6   :  { %v2477_v51 = vpop.f32.mrf.mxu1 }
 0x1d7   :  { %v461_v35 = vmul.f32 %v2477_v51, %v2477_v51  ;;  %v429_v15 = vsel %vm417_vm6, %v2477_v51, 0.0 }
 0x1d8   :  { %v430_v22 = vadd.f32 %v429_v15, %v428_v40 }
 0x1d9   :  { %v482_v18 = vsel %vm417_vm6, %v461_v35, 0.0 }
 0x1da   :  { %v483_v49 = vadd.f32 %v482_v18, %v481_v21 }
 0x1de   :  { %v2479_v52 = vpop.f32.mrf.mxu1 }
 0x1df   :  { %v462_v16 = vmul.f32 %v2479_v52, %v2479_v52  ;;  %v431_v62 = vsel %vm417_vm6, %v2479_v52, 0.0 }
 0x1e0   :  { %v432_v25 = vadd.f32 %v431_v62, %v430_v22 }
 0x1e1   :  { %v484_v23 = vsel %vm417_vm6, %v462_v16, 0.0 }
 0x1e2   :  { %v485_v39 = vadd.f32 %v484_v23, %v483_v49 }
 0x1e6   :  { %v2483_v54 = vpop.f32.mrf.mxu1 }
 0x1e7   :  { %v463_v19 = vmul.f32 %v2483_v54, %v2483_v54  ;;  %v433_v24 = vsel %vm417_vm6, %v2483_v54, 0.0 }
 0x1e8   :  { %v434_v41 = vadd.f32 %v433_v24, %v432_v25 }
 0x1e9   :  { %v486_v36 = vsel %vm417_vm6, %v463_v19, 0.0 }
 0x1ea   :  { %v487_v44 = vadd.f32 %v486_v36, %v485_v39 }
 0x1ee   :  { %v2508_v20 = vpop.f32.mrf.mxu1 }
 0x1ef   :  { %v464_v29 = vmul.f32 %v2508_v20, %v2508_v20  ;;  %v435_v37 = vsel %vm417_vm6, %v2508_v20, 0.0 }
 0x1f0   :  { %v436_v45 = vadd.f32 %v435_v37, %v434_v41 }
 0x1f1   :  { %v488_v42 = vsel %vm417_vm6, %v464_v29, 0.0 }
 0x1f2   :  { %v489_v55 = vadd.f32 %v488_v42, %v487_v44 }
 0x1f6   :  { %v2530_v28 = vpop.f32.mrf.mxu1 }
 0x1f7   :  { %v465_v38 = vmul.f32 %v2530_v28, %v2530_v28  ;;  %v437_v43 = vsel %vm417_vm6, %v2530_v28, 0.0 }
 0x1f8   :  { %v438_v56 = vadd.f32 %v437_v43, %v436_v45  ;;  %v2069_v43 = vld [vmem:[%s3232_s7 + $0x18] sm:$0xff]  ;;  %v2068_v45 = vld [vmem:[%s3232_s7 + $0x10] sm:$0xff] }
 0x1f9   :  { %v490_v46 = vsel %vm417_vm6, %v465_v38, 0.0  ;;  %651 = vmatpush.bf16.msra.mxu2 %v2069_v43  ;;  %2105 = vmatpush.bf16.msra.mxu3 %v2069_v43 }
 0x1fa   :  { %v491_v61 = vadd.f32 %v490_v46, %v489_v55  ;;  %v2067_v55 = vld [vmem:[%s3232_s7 + $0x8] sm:$0xff] }
 0x1fd   :  { %652 = vmatpush.bf16.msra.mxu2 %v2068_v45  ;;  %2106 = vmatpush.bf16.msra.mxu3 %v2068_v45 }
 0x1fe   :  { %v2548_v57 = vpop.f32.mrf.mxu1 }
 0x1ff   :  { %v439_v59 = vsel %vm417_vm6, %v2548_v57, 0.0  ;;  %v466_v60 = vmul.f32 %v2548_v57, %v2548_v57 }
 0x200   :  { %v440_v63 = vadd.f32 %v439_v59, %v438_v56  ;;  %v2066_v56 = vld [vmem:[%s3232_s7] sm:$0xff] }
 0x201   :  { %v492_v2 = vsel %vm417_vm6, %v466_v60, 0.0  ;;  %653 = vmatpush.bf16.msra.mxu2 %v2067_v55  ;;  %2107 = vmatpush.bf16.msra.mxu3 %v2067_v55 }
 0x202   :  { %v442_v4 = vadd.f32 %v441_v0, %v440_v63  ;;  %v493_v26 = vadd.f32 %v492_v2, %v491_v61  ;;  %v513_v0 = vld [vmem:[%s3233_s5] sm:$0x1] }
 0x204   :  { %v444_v7 = vadd.f32 %v443_v5, %v442_v4  ;;  %v495_v8 = vadd.f32 %v494_v27, %v493_v26  ;;  %v526_v26 = vld [vmem:[%s3234_s6] sm:$0x1] }
 0x205   :  { %654 = vmatpush.bf16.msra.mxu2 %v2066_v56  ;;  %2108 = vmatpush.bf16.msra.mxu3 %v2066_v56 }
 0x206   :  { %v446_v35 = vadd.f32 %v445_v10, %v444_v7  ;;  %v497_v11 = vadd.f32 %v496_v9, %v495_v8 }
 0x208   :  { %v448_v15 = vadd.f32 %v447_v13, %v446_v35  ;;  %v499_v16 = vadd.f32 %v498_v12, %v497_v11 }
 0x20a   :  { %v449_v40 = vrot.slane %v448_v15, 4  ;;  %v501_v18 = vadd.f32 %v500_v17, %v499_v16 }
 0x20c   :  { %v450_v62 = vadd.f32 %v449_v40, %v448_v15  ;;  %v502_v19 = vrot.slane %v501_v18, 4 }
 0x20e   :  { %v451_v21 = vrot.slane %v450_v62, 2  ;;  %v503_v22 = vadd.f32 %v502_v19, %v501_v18 }
 0x210   :  { %v452_v23 = vadd.f32 %v451_v21, %v450_v62  ;;  %v504_v24 = vrot.slane %v503_v22, 2 }
 0x212   :  { %v453_v29 = vrot.slane %v452_v23, 1  ;;  %v505_v49 = vadd.f32 %v504_v24, %v503_v22 }
 0x214   :  { %v454_v25 = vadd.f32 %v453_v29, %v452_v23  ;;  %v506_v36 = vrot.slane %v505_v49, 1 }
 0x216   :  { %v507_v37 = vadd.f32 %v506_v36, %v505_v49  ;;  %v508_v38 = vmul.f32 0.0078125, %v454_v25 }
 0x218   :  { %v509_v39 = vmul.f32 0.0078125, %v507_v37  ;;  %v510_v41 = vmul.f32 %v508_v38, %v508_v38 }
 0x21a   :  { %v511_v42 = vsub.f32 %v509_v39, %v510_v41 }
 0x21c   :  { %v512_v44 = vmax.f32 %v511_v42, 0.0 }
 0x21e   :  { %v514_v46 = vadd.f32 1e-05, %v512_v44 }
 0x220   :  { %2112 = vrsqrt.f32 %v514_v46  ;;  %vm521_vm8 = vweird.f32 %v514_v46 }
 0x226   :  { %v2113_v58 = vpop.eup %2112 }
 0x227   :  { %v516_v59 = vmul.f32 %v2113_v58, %v514_v46  ;;  %vm522_vm7 = vweird.f32 %v2113_v58 }
 0x228   :  { %vm523_vm9 = vmor %vm521_vm8, %vm522_vm7 }
 0x229   :  { %v517_v60 = vmul.f32 %v2113_v58, %v516_v59 }
 0x22b   :  { %v518_v61 = vmul.f32 0.5, %v517_v60 }
 0x22d   :  { %v519_v63 = vsub.f32 1.5, %v518_v61 }
 0x22f   :  { %v520_v1 = vmul.f32 %v2113_v58, %v519_v63 }
 0x231   :  { %v524_v2 = vsel %vm523_vm9, %v2113_v58, %v520_v1 }
 0x232   :  { %v525_v4 = vmul.f32 %v524_v2, %v513_v0 }
 0x234   :  { %v527_v27 = vmul.f32 %v525_v4, %v508_v38  ;;  %v530_v5 = vperm.slane %v525_v4, 0 }
 0x236   :  { %v528_v6 = vsub.f32 %v526_v26, %v527_v27  ;;  %v532_v8 = vmul.f32 %v530_v5, %v2465_v30  ;;  %v533_v9 = vmul.f32 %v530_v5, %v2467_v31  ;;  %v536_v10 = vmul.f32 %v530_v5, %v2473_v33 }
 0x237   :  { %v537_v34 = vmul.f32 %v530_v5, %v2475_v48  ;;  %v544_v62 = vmul.f32 %v530_v5, %v2481_v53  ;;  %v545_v30 = vmul.f32 %v530_v5, %v2506_v50  ;;  %v546_v48 = vmul.f32 %v530_v5, %v2537_v14 }
 0x238   :  { %v549_v7 = vperm.slane %v528_v6, 0  ;;  %v547_v21 = vmul.f32 %v530_v5, %v2561_v3  ;;  %v534_v49 = vmul.f32 %v530_v5, %v2469_v47  ;;  %v535_v53 = vmul.f32 %v530_v5, %v2471_v32  ;;  %v1978_v6 = vld [vmem:[%s3235_s10 + $0x70] sm:$0xf] }
 0x239   :  { %v538_v50 = vmul.f32 %v530_v5, %v2477_v51  ;;  %v539_v25 = vmul.f32 %v530_v5, %v2479_v52  ;;  %v540_v32 = vmul.f32 %v530_v5, %v2483_v54  ;;  %v541_v51 = vmul.f32 %v530_v5, %v2508_v20  ;;  %v2084_v20 = vld [vmem:[%s3235_s10 + $0x74] sm:$0xf] }
 0x23a   :  { %v551_v35 = vadd.f32 %v549_v7, %v532_v8  ;;  %v552_v11 = vadd.f32 %v549_v7, %v533_v9  ;;  %v555_v12 = vadd.f32 %v549_v7, %v536_v10  ;;  %v556_v13 = vadd.f32 %v549_v7, %v537_v34  ;;  %v2082_v8 = vld [vmem:[%s3235_s10 + $0x64] sm:$0xf]  ;;  %v1972_v34 = vld [vmem:[%s3235_s10 + $0x68] sm:$0xf0] }
 0x23b   :  { %v563_v31 = vadd.f32 %v549_v7, %v544_v62  ;;  %v564_v33 = vadd.f32 %v549_v7, %v545_v30  ;;  %v565_v24 = vadd.f32 %v549_v7, %v546_v48  ;;  %v566_v29 = vadd.f32 %v549_v7, %v547_v21  ;;  %v2078_v48 = vld [vmem:[%s3235_s10 + $0x44] sm:$0xf] }
 0x23c   :  { %v567_v15 = vmax.f32 %v551_v35, 0.0  ;;  %v568_v16 = vmax.f32 %v552_v11, 0.0  ;;  %v571_v17 = vmax.f32 %v555_v12, 0.0  ;;  %v572_v40 = vmax.f32 %v556_v13, 0.0  ;;  %v1970_v12 = vld [vmem:[%s3235_s10 + $0x60] sm:$0xf] }
 0x23d   :  { %v579_v22 = vmax.f32 %v563_v31, 0.0  ;;  %v580_v23 = vmax.f32 %v564_v33, 0.0  ;;  %v581_v37 = vmax.f32 %v565_v24, 0.0  ;;  %v582_v38 = vmax.f32 %v566_v29, 0.0  ;;  %v2083_v13 = vld [vmem:[%s3235_s10 + $0x64] sm:$0xf0] }
 0x23e   :  { %v583_v18 = vpack.c.bf16 %v568_v16, %v567_v15  ;;  %v585_v19 = vpack.c.bf16 %v572_v40, %v571_v17  ;;  %v553_v39 = vadd.f32 %v549_v7, %v534_v49  ;;  %v554_v41 = vadd.f32 %v549_v7, %v535_v53  ;;  %v2080_v40 = vld [vmem:[%s3235_s10 + $0x54] sm:$0xf]  ;;  %v1962_v31 = vld [vmem:[%s3235_s10 + $0x50] sm:$0xf]  ;;  %v2081_v33 = vld [vmem:[%s3235_s10 + $0x54] sm:$0xf0] }
 0x23f   :  { %v589_v36 = vpack.c.bf16 %v580_v23, %v579_v22  ;;  %v557_v14 = vadd.f32 %v549_v7, %v538_v50  ;;  %v558_v42 = vadd.f32 %v549_v7, %v539_v25  ;;  %v590_v3 = vpack.c.bf16 %v582_v38, %v581_v37  ;;  %v1956_v22 = vld [vmem:[%s3235_s10 + $0x48] sm:$0xf0]  ;;  %v2079_v37 = vld [vmem:[%s3235_s10 + $0x44] sm:$0xf0] }
 0x240   :  { %1912 = vmatmul.msk.bf16.vlgmr.msra.gmra.mxu2 %vm417_vm6, %v583_v18  ;;  %1914 = vmatmul.msk.bf16.vlgmr.msra.gmra.mxu3 %vm417_vm6, %v585_v19  ;;  %v569_v43 = vmax.f32 %v553_v39, 0.0  ;;  %v570_v44 = vmax.f32 %v554_v41, 0.0  ;;  %v559_v52 = vadd.f32 %v549_v7, %v540_v32  ;;  %v560_v56 = vadd.f32 %v549_v7, %v541_v51  ;;  %v1964_v18 = vld [vmem:[%s3235_s10 + $0x58] sm:$0xf0] }
 0x241   :  { %v573_v45 = vmax.f32 %v557_v14, 0.0  ;;  %v574_v46 = vmax.f32 %v558_v42, 0.0  ;;  %v543_v61 = vmul.f32 %v530_v5, %v2548_v57  ;;  %v542_v63 = vmul.f32 %v530_v5, %v2530_v28  ;;  %v1980_v28 = vld [vmem:[%s3235_s10 + $0x78] sm:$0xf0] }
 0x242   :  { %v584_v55 = vpack.c.bf16 %v570_v44, %v569_v43  ;;  %v575_v58 = vmax.f32 %v559_v52, 0.0  ;;  %v576_v59 = vmax.f32 %v560_v56, 0.0  ;;  %v1983_v57 = vor.u32 %v2084_v20, %v1980_v28 }
 0x243   :  { %v586_v47 = vpack.c.bf16 %v574_v46, %v573_v45  ;;  %v562_v0 = vadd.f32 %v549_v7, %v543_v61  ;;  %v561_v1 = vadd.f32 %v549_v7, %v542_v63  ;;  %v2085_v7 = vld [vmem:[%s3235_s10 + $0x74] sm:$0xf0]  ;;  %v1975_v35 = vor.u32 %v2082_v8, %v1972_v34 }
 0x244   :  { %v587_v60 = vpack.c.bf16 %v576_v59, %v575_v58  ;;  %982 = vmatpush.bf16.msrb.mxu0 %v1983_v57  ;;  %v1979_v10 = vor.u32 %v2085_v7, %v1978_v6  ;;  %v1971_v15 = vor.u32 %v2083_v13, %v1970_v12  ;;  %v1967_v62 = vor.u32 %v2080_v40, %v1964_v18 }
 0x245   :  { %v577_v2 = vmax.f32 %v561_v1, 0.0  ;;  %v578_v4 = vmax.f32 %v562_v0, 0.0  ;;  %v1963_v21 = vor.u32 %v2081_v33, %v1962_v31  ;;  %v1959_v23 = vor.u32 %v2078_v48, %v1956_v22 }
 0x246   :  { %933 = vmatpush.bf16.msrb.mxu3 %v1979_v10 }
 0x247   :  { %v588_v26 = vpack.c.bf16 %v578_v4, %v577_v2 }
 0x248   :  { %983 = vmatpush.bf16.msrb.mxu0 %v1975_v35 }
 0x24a   :  { %934 = vmatpush.bf16.msrb.mxu3 %v1971_v15 }
 0x24c   :  { %984 = vmatpush.bf16.msrb.mxu0 %v1967_v62 }
 0x24e   :  { %935 = vmatpush.bf16.msrb.mxu3 %v1963_v21 }
 0x250   :  { %1913 = vmatmul.msk.bf16.gmra.mxu2 %vm417_vm6, %v584_v55  ;;  %1915 = vmatmul.msk.bf16.gmra.mxu3 %vm417_vm6, %v586_v47 }
 0x251   :  { %985 = vmatpush.bf16.msrb.mxu0 %v1959_v23 }
 0x260   :  { %1916 = vmatmul.msk.bf16.gmra.mxu3 %vm417_vm6, %v587_v60 }
 0x270   :  { %1917 = vmatmul.msk.bf16.gmra.mxu3 %vm417_vm6, %v588_v26 }
 0x280   :  { %1918 = vmatmul.msk.bf16.gmra.mxu3 %vm417_vm6, %v589_v36  ;;  %v1954_v36 = vld [vmem:[%s3235_s10 + $0x40] sm:$0xf] }
 0x281   :  { %v1955_v38 = vor.u32 %v2079_v37, %v1954_v36 }
 0x283   :  { %936 = vmatpush.bf16.msrb.mxu3 %v1955_v38 }
 0x290   :  { %1919 = vmatmul.msk.bf16.gmra.mxu3 %vm417_vm6, %v590_v3 }
 0x2c3   :  { %v2619_v54 = vpop.f32.mrf.mxu3  ;;  %v2640_v9 = vpop.f32.mrf.mxu2 }
 0x2c4   :  { %v717_v53 = vmul.f32 %v2640_v9, %v2640_v9  ;;  %v721_v45 = vmul.f32 %v2619_v54, %v2619_v54 }
 0x2cb   :  { %v2627_v27 = vpop.f32.mrf.mxu3  ;;  %v2653_v16 = vpop.f32.mrf.mxu2 }
 0x2cc   :  { %v718_v29 = vmul.f32 %v2653_v16, %v2653_v16  ;;  %v696_v50 = vadd.f32 %v2653_v16, %v2640_v9  ;;  %v722_v47 = vmul.f32 %v2627_v27, %v2627_v27 }
 0x2ce   :  { %v733_v39 = vadd.f32 %v718_v29, %v717_v53 }
 0x2d3   :  { %v2629_v5 = vpop.f32.mrf.mxu3  ;;  %v2663_v19 = vpop.f32.mrf.mxu2 }
 0x2d4   :  { %v719_v25 = vmul.f32 %v2663_v19, %v2663_v19  ;;  %v697_v41 = vadd.f32 %v696_v50, %v2663_v19  ;;  %v723_v56 = vmul.f32 %v2629_v5, %v2629_v5 }
 0x2d6   :  { %v734_v42 = vadd.f32 %v733_v39, %v719_v25 }
 0x2db   :  { %v2645_v11 = vpop.f32.mrf.mxu3  ;;  %v2683_v49 = vpop.f32.mrf.mxu2 }
 0x2dc   :  { %v720_v14 = vmul.f32 %v2683_v49, %v2683_v49  ;;  %v698_v3 = vadd.f32 %v697_v41, %v2683_v49  ;;  %v724_v60 = vmul.f32 %v2645_v11, %v2645_v11 }
 0x2de   :  { %v735_v44 = vadd.f32 %v734_v42, %v720_v14  ;;  %v699_v46 = vadd.f32 %v698_v3, %v2619_v54 }
 0x2e0   :  { %v736_v55 = vadd.f32 %v735_v44, %v721_v45  ;;  %v700_v32 = vadd.f32 %v699_v46, %v2627_v27 }
 0x2e2   :  { %v737_v52 = vadd.f32 %v736_v55, %v722_v47  ;;  %v701_v58 = vadd.f32 %v700_v32, %v2629_v5  ;;  %v2076_v47 = vld [vmem:[%s3235_s10 + $0x34] sm:$0xf]  ;;  %v1948_v32 = vld [vmem:[%s3235_s10 + $0x38] sm:$0xf0] }
 0x2e3   :  { %v2655_v17 = vpop.f32.mrf.mxu3 }
 0x2e4   :  { %v738_v59 = vadd.f32 %v737_v52, %v723_v56  ;;  %v702_v61 = vadd.f32 %v701_v58, %v2645_v11  ;;  %v725_v2 = vmul.f32 %v2655_v17, %v2655_v17  ;;  %v1951_v52 = vor.u32 %v2076_v47, %v1948_v32  ;;  %v1946_v56 = vld [vmem:[%s3235_s10 + $0x30] sm:$0xf]  ;;  %v2077_v58 = vld [vmem:[%s3235_s10 + $0x34] sm:$0xf0] }
 0x2e6   :  { %v739_v0 = vadd.f32 %v738_v59, %v724_v60  ;;  %v703_v1 = vadd.f32 %v702_v61, %v2655_v17  ;;  %v1947_v60 = vor.u32 %v2077_v58, %v1946_v56  ;;  %v2074_v61 = vld [vmem:[%s3235_s10 + $0x24] sm:$0xf]  ;;  %986 = vmatpush.bf16.msrb.mxu0 %v1951_v52 }
 0x2e8   :  { %v740_v26 = vadd.f32 %v739_v0, %v725_v2  ;;  %v1940_v0 = vld [vmem:[%s3235_s10 + $0x28] sm:$0xf0]  ;;  %937 = vmatpush.bf16.msrb.mxu3 %v1947_v60 }
 0x2e9   :  { %v1943_v2 = vor.u32 %v2074_v61, %v1940_v0 }
 0x2eb   :  { %v2665_v30 = vpop.f32.mrf.mxu3  ;;  %987 = vmatpush.bf16.msrb.mxu0 %v1943_v2 }
 0x2ec   :  { %v726_v4 = vmul.f32 %v2665_v30, %v2665_v30  ;;  %v704_v20 = vadd.f32 %v703_v1, %v2665_v30  ;;  %v1938_v1 = vld [vmem:[%s3235_s10 + $0x20] sm:$0xf] }
 0x2ee   :  { %v741_v57 = vadd.f32 %v740_v26, %v726_v4  ;;  %v2075_v4 = vld [vmem:[%s3235_s10 + $0x24] sm:$0xf0] }
 0x2f3   :  { %v2679_v24 = vpop.f32.mrf.mxu3 }
 0x2f4   :  { %v727_v28 = vmul.f32 %v2679_v24, %v2679_v24  ;;  %v705_v6 = vadd.f32 %v704_v20, %v2679_v24  ;;  %v1939_v20 = vor.u32 %v2075_v4, %v1938_v1 }
 0x2f6   :  { %v742_v10 = vadd.f32 %v741_v57, %v727_v28  ;;  %v2072_v28 = vld [vmem:[%s3235_s10 + $0x14] sm:$0xf]  ;;  %v1932_v57 = vld [vmem:[%s3235_s10 + $0x18] sm:$0xf0]  ;;  %938 = vmatpush.bf16.msrb.mxu3 %v1939_v20 }
 0x2fb   :  { %v2701_v43 = vpop.f32.mrf.mxu3 }
 0x2fc   :  { %v728_v7 = vmul.f32 %v2701_v43, %v2701_v43  ;;  %v706_v34 = vadd.f32 %v705_v6, %v2701_v43  ;;  %v1930_v6 = vld [vmem:[%s3235_s10 + $0x10] sm:$0xf] }
 0x2fe   :  { %v743_v12 = vadd.f32 %v742_v10, %v728_v7  ;;  %v2073_v7 = vld [vmem:[%s3235_s10 + $0x14] sm:$0xf0] }
 0x303   :  { %v2709_v51 = vpop.f32.mrf.mxu3 }
 0x304   :  { %v729_v35 = vmul.f32 %v2709_v51, %v2709_v51  ;;  %v707_v13 = vadd.f32 %v706_v34, %v2709_v51  ;;  %v1935_v34 = vor.u32 %v2072_v28, %v1932_v57 }
 0x306   :  { %v744_v40 = vadd.f32 %v743_v12, %v729_v35  ;;  %v1931_v35 = vor.u32 %v2073_v7, %v1930_v6  ;;  %v2070_v12 = vld [vmem:[%s3235_s10 + $0x4] sm:$0xf]  ;;  %988 = vmatpush.bf16.msrb.mxu0 %v1935_v34 }
 0x308   :  { %939 = vmatpush.bf16.msrb.mxu3 %v1931_v35 }
 0x30b   :  { %v2717_v63 = vpop.f32.mrf.mxu3 }
 0x30c   :  { %v730_v15 = vmul.f32 %v2717_v63, %v2717_v63  ;;  %v708_v18 = vadd.f32 %v707_v13, %v2717_v63  ;;  %v1924_v13 = vld [vmem:[%s3235_s10 + $0x8] sm:$0xf0] }
 0x30e   :  { %v745_v31 = vadd.f32 %v744_v40, %v730_v15  ;;  %v1922_v15 = vld [vmem:[%s3235_s10] sm:$0xf]  ;;  %v2071_v40 = vld [vmem:[%s3235_s10 + $0x4] sm:$0xf0] }
 0x313   :  { %v2730_v8 = vpop.f32.mrf.mxu3 }
 0x314   :  { %v731_v62 = vmul.f32 %v2730_v8, %v2730_v8  ;;  %v709_v33 = vadd.f32 %v708_v18, %v2730_v8  ;;  %v1927_v18 = vor.u32 %v2070_v12, %v1924_v13 }
 0x316   :  { %v746_v21 = vadd.f32 %v745_v31, %v731_v62  ;;  %v1923_v62 = vor.u32 %v2071_v40, %v1922_v15  ;;  %989 = vmatpush.bf16.msrb.mxu0 %v1927_v18 }
 0x318   :  { %940 = vmatpush.bf16.msrb.mxu3 %v1923_v62 }
 0x31b   :  { %v2742_v48 = vpop.f32.mrf.mxu3 }
 0x31c   :  { %v710_v22 = vadd.f32 %v709_v33, %v2742_v48  ;;  %v732_v23 = vmul.f32 %v2742_v48, %v2742_v48 }
 0x31e   :  { %v711_v29 = vrot.slane %v710_v22, 4  ;;  %v747_v53 = vadd.f32 %v746_v21, %v732_v23 }
 0x320   :  { %v712_v50 = vadd.f32 %v711_v29, %v710_v22  ;;  %v748_v25 = vrot.slane %v747_v53, 4  ;;  %v759_v29 = vld [vmem:[%s3236_s8] sm:$0x1] }
 0x322   :  { %v713_v36 = vrot.slane %v712_v50, 2  ;;  %v749_v37 = vadd.f32 %v748_v25, %v747_v53 }
 0x324   :  { %v714_v38 = vadd.f32 %v713_v36, %v712_v50  ;;  %v750_v39 = vrot.slane %v749_v37, 2  ;;  %v772_v36 = vld [vmem:[%s3237_s9] sm:$0x1] }
 0x326   :  { %v715_v41 = vrot.slane %v714_v38, 1  ;;  %v751_v14 = vadd.f32 %v750_v39, %v749_v37 }
 0x328   :  { %v716_v42 = vadd.f32 %v715_v41, %v714_v38  ;;  %v752_v3 = vrot.slane %v751_v14, 1 }
 0x32a   :  { %v753_v44 = vadd.f32 %v752_v3, %v751_v14  ;;  %v754_v45 = vmul.f32 0.0078125, %v716_v42 }
 0x32c   :  { %v755_v46 = vmul.f32 0.0078125, %v753_v44  ;;  %v756_v55 = vmul.f32 %v754_v45, %v754_v45 }
 0x32e   :  { %v757_v59 = vsub.f32 %v755_v46, %v756_v55 }
 0x330   :  { %v758_v26 = vmax.f32 %v757_v59, 0.0 }
 0x332   :  { %v760_v10 = vadd.f32 1e-05, %v758_v26 }
 0x334   :  { %2114 = vrsqrt.f32 %v760_v10  ;;  %vm767_vm11 = vweird.f32 %v760_v10 }
 0x33a   :  { %v2115_v31 = vpop.eup %2114 }
 0x33b   :  { %v762_v33 = vmul.f32 %v2115_v31, %v760_v10  ;;  %vm768_vm10 = vweird.f32 %v2115_v31 }
 0x33c   :  { %vm769_vm12 = vmor %vm767_vm11, %vm768_vm10 }
 0x33d   :  { %v763_v21 = vmul.f32 %v2115_v31, %v762_v33 }
 0x33f   :  { %v764_v22 = vmul.f32 0.5, %v763_v21 }
 0x341   :  { %v765_v23 = vsub.f32 1.5, %v764_v22 }
 0x343   :  { %v766_v53 = vmul.f32 %v2115_v31, %v765_v23 }
 0x345   :  { %v770_v50 = vsel %vm769_vm12, %v2115_v31, %v766_v53 }
 0x346   :  { %v771_v25 = vmul.f32 %v770_v50, %v759_v29 }
 0x348   :  { %v773_v37 = vmul.f32 %v771_v25, %v754_v45  ;;  %v776_v38 = vperm.slane %v771_v25, 0 }
 0x34a   :  { %v774_v39 = vsub.f32 %v772_v36, %v773_v37  ;;  %v793_v41 = vmul.f32 %v776_v38, %v2742_v48  ;;  %v778_v42 = vmul.f32 %v776_v38, %v2640_v9  ;;  %v779_v3 = vmul.f32 %v776_v38, %v2653_v16 }
 0x34b   :  { %v786_v52 = vmul.f32 %v776_v38, %v2655_v17  ;;  %v787_v56 = vmul.f32 %v776_v38, %v2665_v30  ;;  %v788_v45 = vmul.f32 %v776_v38, %v2679_v24  ;;  %v789_v58 = vmul.f32 %v776_v38, %v2701_v43 }
 0x34c   :  { %v795_v14 = vperm.slane %v774_v39, 0  ;;  %v790_v16 = vmul.f32 %v776_v38, %v2709_v51  ;;  %v791_v2 = vmul.f32 %v776_v38, %v2717_v63  ;;  %v792_v24 = vmul.f32 %v776_v38, %v2730_v8 }
 0x34d   :  { %v780_v7 = vmul.f32 %v776_v38, %v2663_v19  ;;  %v781_v51 = vmul.f32 %v776_v38, %v2683_v49  ;;  %v782_v8 = vmul.f32 %v776_v38, %v2619_v54  ;;  %v783_v62 = vmul.f32 %v776_v38, %v2627_v27 }
 0x34e   :  { %v812_v44 = vadd.f32 %v795_v14, %v793_v41  ;;  %v797_v46 = vadd.f32 %v795_v14, %v778_v42  ;;  %v798_v55 = vadd.f32 %v795_v14, %v779_v3  ;;  %v805_v48 = vadd.f32 %v795_v14, %v786_v52 }
 0x34f   :  { %v806_v60 = vadd.f32 %v795_v14, %v787_v56  ;;  %v807_v61 = vadd.f32 %v795_v14, %v788_v45  ;;  %v808_v9 = vadd.f32 %v795_v14, %v789_v58  ;;  %v809_v30 = vadd.f32 %v795_v14, %v790_v16  ;;  %v2093_v56 = vld [vmem:[%s3238_s13 + $0x38] sm:$0xff] }
 0x350   :  { %v813_v47 = vmax.f32 %v797_v46, 0.0  ;;  %v814_v32 = vmax.f32 %v798_v55, 0.0  ;;  %v821_v0 = vmax.f32 %v805_v48, 0.0  ;;  %v810_v43 = vadd.f32 %v795_v14, %v791_v2  ;;  %1450 = vmatpush.bf16.msrb.mxu1 %v2093_v56 }
 0x351   :  { %v822_v1 = vmax.f32 %v806_v60, 0.0  ;;  %v823_v17 = vmax.f32 %v807_v61, 0.0  ;;  %v824_v4 = vmax.f32 %v808_v9, 0.0  ;;  %v825_v28 = vmax.f32 %v809_v30, 0.0 }
 0x352   :  { %v829_v59 = vpack.c.bf16 %v814_v32, %v813_v47  ;;  %v811_v57 = vadd.f32 %v795_v14, %v792_v24  ;;  %v828_v6 = vmax.f32 %v812_v44, 0.0  ;;  %v826_v10 = vmax.f32 %v810_v43, 0.0 }
 0x353   :  { %v833_v26 = vpack.c.bf16 %v822_v1, %v821_v0  ;;  %v834_v20 = vpack.c.bf16 %v824_v4, %v823_v17  ;;  %v799_v35 = vadd.f32 %v795_v14, %v780_v7  ;;  %v800_v12 = vadd.f32 %v795_v14, %v781_v51 }
 0x354   :  { %941 = vmatmul.bf16.vlgmr.msrb.gmra.mxu3 %v829_v59  ;;  %990 = vmatmul.bf16.vlgmr.msrb.gmra.mxu0 %v829_v59  ;;  %v827_v34 = vmax.f32 %v811_v57, 0.0  ;;  %v835_v63 = vpack.c.bf16 %v826_v10, %v825_v28  ;;  %v801_v31 = vadd.f32 %v795_v14, %v782_v8  ;;  %v802_v33 = vadd.f32 %v795_v14, %v783_v62  ;;  %v2092_v59 = vld [vmem:[%s3238_s13 + $0x30] sm:$0xff] }
 0x355   :  { %v815_v15 = vmax.f32 %v799_v35, 0.0  ;;  %v816_v40 = vmax.f32 %v800_v12, 0.0  ;;  %v784_v22 = vmul.f32 %v776_v38, %v2629_v5  ;;  %v785_v23 = vmul.f32 %v776_v38, %v2645_v11  ;;  %1451 = vmatpush.bf16.msrb.mxu1 %v2092_v59 }
 0x356   :  { %v836_v13 = vpack.c.bf16 %v828_v6, %v827_v34  ;;  %v817_v19 = vmax.f32 %v801_v31, 0.0  ;;  %v818_v21 = vmax.f32 %v802_v33, 0.0 }
 0x357   :  { %v830_v18 = vpack.c.bf16 %v816_v40, %v815_v15  ;;  %v803_v29 = vadd.f32 %v795_v14, %v784_v22  ;;  %v804_v53 = vadd.f32 %v795_v14, %v785_v23 }
 0x358   :  { %v831_v49 = vpack.c.bf16 %v818_v21, %v817_v19 }
 0x359   :  { %v819_v50 = vmax.f32 %v803_v29, 0.0  ;;  %v820_v25 = vmax.f32 %v804_v53, 0.0 }
 0x35b   :  { %v832_v36 = vpack.c.bf16 %v820_v25, %v819_v50 }
 0x364   :  { %946 = vmatmul.bf16.gmra.mxu3 %v830_v18  ;;  %995 = vmatmul.bf16.gmra.mxu0 %v830_v18 }
 0x374   :  { %951 = vmatmul.bf16.gmra.mxu3 %v831_v49  ;;  %1000 = vmatmul.bf16.gmra.mxu0 %v831_v49 }
 0x384   :  { %956 = vmatmul.bf16.gmra.mxu3 %v832_v36  ;;  %1005 = vmatmul.bf16.gmra.mxu0 %v832_v36 }
 0x394   :  { %961 = vmatmul.bf16.gmra.mxu3 %v833_v26  ;;  %1010 = vmatmul.bf16.gmra.mxu0 %v833_v26 }
 0x3a4   :  { %966 = vmatmul.bf16.gmra.mxu3 %v834_v20  ;;  %1015 = vmatmul.bf16.gmra.mxu0 %v834_v20 }
 0x3b4   :  { %971 = vmatmul.bf16.gmra.mxu3 %v835_v63  ;;  %1020 = vmatmul.bf16.gmra.mxu0 %v835_v63 }
 0x3c4   :  { %976 = vmatmul.bf16.gmra.mxu3 %v836_v13  ;;  %1025 = vmatmul.bf16.gmra.mxu0 %v836_v13 }
 0x3d1   :  { %v2817_v54 = vpop.f32.mrf.mxu0 }
 0x3d2   :  { %v1074_v0 = vmul.f32 %v2817_v54, %v2817_v54 }
 0x3d7   :  { %v2819_v27 = vpop.f32.mrf.mxu3 }
 0x3d8   :  { %v1073_v6 = vmul.f32 %v2819_v27, %v2819_v27 }
 0x3d9   :  { %v2821_v5 = vpop.f32.mrf.mxu0 }
 0x3da   :  { %v1076_v16 = vmul.f32 %v2821_v5, %v2821_v5  ;;  %v1052_v1 = vadd.f32 %v2821_v5, %v2817_v54 }
 0x3dc   :  { %v1126_v4 = vadd.f32 %v1076_v16, %v1074_v0 }
 0x3df   :  { %v2823_v11 = vpop.f32.mrf.mxu3 }
 0x3e0   :  { %v1075_v26 = vmul.f32 %v2823_v11, %v2823_v11  ;;  %v1031_v51 = vadd.f32 %v2823_v11, %v2819_v27 }
 0x3e1   :  { %v2825_v37 = vpop.f32.mrf.mxu0 }
 0x3e2   :  { %v1078_v2 = vmul.f32 %v2825_v37, %v2825_v37  ;;  %v1053_v30 = vadd.f32 %v1052_v1, %v2825_v37  ;;  %v1105_v12 = vadd.f32 %v1075_v26, %v1073_v6 }
 0x3e4   :  { %v1127_v20 = vadd.f32 %v1126_v4, %v1078_v2 }
 0x3e7   :  { %v2827_v38 = vpop.f32.mrf.mxu3 }
 0x3e8   :  { %v1077_v7 = vmul.f32 %v2827_v38, %v2827_v38  ;;  %v1032_v13 = vadd.f32 %v1031_v51, %v2827_v38 }
 0x3e9   :  { %v2829_v39 = vpop.f32.mrf.mxu0 }
 0x3ea   :  { %v1080_v24 = vmul.f32 %v2829_v39, %v2829_v39  ;;  %v1054_v28 = vadd.f32 %v1053_v30, %v2829_v39  ;;  %v1106_v8 = vadd.f32 %v1105_v12, %v1077_v7 }
 0x3ec   :  { %v1128_v10 = vadd.f32 %v1127_v20, %v1080_v24 }
 0x3ef   :  { %v2831_v41 = vpop.f32.mrf.mxu3 }
 0x3f0   :  { %v1079_v63 = vmul.f32 %v2831_v41, %v2831_v41  ;;  %v1033_v33 = vadd.f32 %v1032_v13, %v2831_v41 }
 0x3f1   :  { %v2833_v14 = vpop.f32.mrf.mxu0 }
 0x3f2   :  { %v1082_v57 = vmul.f32 %v2833_v14, %v2833_v14  ;;  %v1055_v34 = vadd.f32 %v1054_v28, %v2833_v14  ;;  %v1107_v22 = vadd.f32 %v1106_v8, %v1079_v63 }
 0x3f4   :  { %v1129_v15 = vadd.f32 %v1128_v10, %v1082_v57 }
 0x3f7   :  { %v2835_v42 = vpop.f32.mrf.mxu3 }
 0x3f8   :  { %v1081_v62 = vmul.f32 %v2835_v42, %v2835_v42  ;;  %v1034_v53 = vadd.f32 %v1033_v33, %v2835_v42 }
 0x3f9   :  { %v2837_v3 = vpop.f32.mrf.mxu0 }
 0x3fa   :  { %v1084_v35 = vmul.f32 %v2837_v3, %v2837_v3  ;;  %v1056_v40 = vadd.f32 %v1055_v34, %v2837_v3  ;;  %v1108_v56 = vadd.f32 %v1107_v22, %v1081_v62 }
 0x3fc   :  { %v1130_v19 = vadd.f32 %v1129_v15, %v1084_v35 }
 0x3ff   :  { %v2839_v44 = vpop.f32.mrf.mxu3 }
 0x400   :  { %v1083_v23 = vmul.f32 %v2839_v44, %v2839_v44  ;;  %v1035_v16 = vadd.f32 %v1034_v53, %v2839_v44 }
 0x401   :  { %v2841_v46 = vpop.f32.mrf.mxu0 }
 0x402   :  { %v1086_v18 = vmul.f32 %v2841_v46, %v2841_v46  ;;  %v1057_v21 = vadd.f32 %v1056_v40, %v2841_v46  ;;  %v1109_v4 = vadd.f32 %v1108_v56, %v1083_v23 }
 0x404   :  { %v1131_v50 = vadd.f32 %v1130_v19, %v1086_v18 }
 0x407   :  { %v2843_v55 = vpop.f32.mrf.mxu3 }
 0x408   :  { %v1085_v59 = vmul.f32 %v2843_v55, %v2843_v55  ;;  %v1036_v24 = vadd.f32 %v1035_v16, %v2843_v55 }
 0x409   :  { %v2845_v47 = vpop.f32.mrf.mxu0 }
 0x40a   :  { %v1088_v49 = vmul.f32 %v2845_v47, %v2845_v47  ;;  %v1058_v25 = vadd.f32 %v1057_v21, %v2845_v47  ;;  %v1110_v57 = vadd.f32 %v1109_v4, %v1085_v59 }
 0x40c   :  { %v1132_v0 = vadd.f32 %v1131_v50, %v1088_v49 }
 0x40f   :  { %v2847_v32 = vpop.f32.mrf.mxu3 }
 0x410   :  { %v1087_v30 = vmul.f32 %v2847_v32, %v2847_v32  ;;  %v1037_v51 = vadd.f32 %v1036_v24, %v2847_v32 }
 0x411   :  { %v2849_v52 = vpop.f32.mrf.mxu0 }
 0x412   :  { %v1090_v36 = vmul.f32 %v2849_v52, %v2849_v52  ;;  %v1059_v1 = vadd.f32 %v1058_v25, %v2849_v52  ;;  %v1111_v12 = vadd.f32 %v1110_v57, %v1087_v30 }
 0x414   :  { %v1133_v26 = vadd.f32 %v1132_v0, %v1090_v36 }
 0x417   :  { %v2854_v45 = vpop.f32.mrf.mxu3 }
 0x418   :  { %v1089_v6 = vmul.f32 %v2854_v45, %v2854_v45  ;;  %v1038_v15 = vadd.f32 %v1037_v51, %v2854_v45 }
 0x419   :  { %v2856_v58 = vpop.f32.mrf.mxu0 }
 0x41a   :  { %v1092_v2 = vmul.f32 %v2856_v58, %v2856_v58  ;;  %v1060_v20 = vadd.f32 %v1059_v1, %v2856_v58  ;;  %v1112_v62 = vadd.f32 %v1111_v12, %v1089_v6 }
 0x41c   :  { %v1134_v10 = vadd.f32 %v1133_v26, %v1092_v2 }
 0x41f   :  { %v2861_v48 = vpop.f32.mrf.mxu3 }
 0x420   :  { %v1091_v63 = vmul.f32 %v2861_v48, %v2861_v48  ;;  %v1039_v19 = vadd.f32 %v1038_v15, %v2861_v48 }
 0x421   :  { %v2863_v60 = vpop.f32.mrf.mxu0 }
 0x422   :  { %v1094_v28 = vmul.f32 %v2863_v60, %v2863_v60  ;;  %v1061_v34 = vadd.f32 %v1060_v20, %v2863_v60  ;;  %v1113_v23 = vadd.f32 %v1112_v62, %v1091_v63 }
 0x424   :  { %v1135_v40 = vadd.f32 %v1134_v10, %v1094_v28 }
 0x427   :  { %v2865_v61 = vpop.f32.mrf.mxu3 }
 0x428   :  { %v1093_v33 = vmul.f32 %v2865_v61, %v2865_v61  ;;  %v1040_v50 = vadd.f32 %v1039_v19, %v2865_v61 }
 0x429   :  { %v2867_v9 = vpop.f32.mrf.mxu0 }
 0x42a   :  { %v1096_v35 = vmul.f32 %v2867_v9, %v2867_v9  ;;  %v1062_v18 = vadd.f32 %v1061_v34, %v2867_v9  ;;  %v1114_v59 = vadd.f32 %v1113_v23, %v1093_v33 }
 0x42c   :  { %v1136_v21 = vadd.f32 %v1135_v40, %v1096_v35 }
 0x42f   :  { %v2877_v17 = vpop.f32.mrf.mxu3 }
 0x430   :  { %v1095_v53 = vmul.f32 %v2877_v17, %v2877_v17  ;;  %v1041_v1 = vadd.f32 %v1040_v50, %v2877_v17 }
 0x431   :  { %v2884_v43 = vpop.f32.mrf.mxu0 }
 0x432   :  { %v1098_v8 = vmul.f32 %v2884_v43, %v2884_v43  ;;  %v1063_v49 = vadd.f32 %v1062_v18, %v2884_v43  ;;  %v1115_v30 = vadd.f32 %v1114_v59, %v1095_v53 }
 0x434   :  { %v1137_v25 = vadd.f32 %v1136_v21, %v1098_v8 }
 0x437   :  { %v2906_v31 = vpop.f32.mrf.mxu3 }
 0x438   :  { %v1097_v16 = vmul.f32 %v2906_v31, %v2906_v31  ;;  %v1042_v20 = vadd.f32 %v1041_v1, %v2906_v31 }
 0x439   :  { %v2914_v29 = vpop.f32.mrf.mxu0 }
 0x43a   :  { %v1100_v22 = vmul.f32 %v2914_v29, %v2914_v29  ;;  %v1064_v36 = vadd.f32 %v1063_v49, %v2914_v29  ;;  %v1116_v51 = vadd.f32 %v1115_v30, %v1097_v16 }
 0x43c   :  { %v1138_v2 = vadd.f32 %v1137_v25, %v1100_v22 }
 0x43f   :  { %v2934_v7 = vpop.f32.mrf.mxu3 }
 0x440   :  { %v1099_v24 = vmul.f32 %v2934_v7, %v2934_v7  ;;  %v1043_v34 = vadd.f32 %v1042_v20, %v2934_v7 }
 0x441   :  { %v2942_v13 = vpop.f32.mrf.mxu0 }
 0x442   :  { %v1102_v56 = vmul.f32 %v2942_v13, %v2942_v13  ;;  %v1065_v4 = vadd.f32 %v1064_v36, %v2942_v13  ;;  %v1117_v63 = vadd.f32 %v1116_v51, %v1099_v24 }
 0x444   :  { %v1139_v28 = vadd.f32 %v1138_v2, %v1102_v56  ;;  %v2091_v56 = vld [vmem:[%s3238_s13 + $0x28] sm:$0xff] }
 0x445   :  { %1452 = vmatpush.bf16.msrb.mxu1 %v2091_v56 }
 0x447   :  { %v2962_v0 = vpop.f32.mrf.mxu3 }
 0x448   :  { %v1101_v10 = vmul.f32 %v2962_v0, %v2962_v0  ;;  %v1044_v15 = vadd.f32 %v1043_v34, %v2962_v0 }
 0x449   :  { %v2968_v26 = vpop.f32.mrf.mxu0 }
 0x44a   :  { %v1066_v57 = vadd.f32 %v1065_v4, %v2968_v26  ;;  %v1104_v6 = vmul.f32 %v2968_v26, %v2968_v26  ;;  %v1118_v8 = vadd.f32 %v1117_v63, %v1101_v10 }
 0x44c   :  { %v1067_v35 = vrot.slane %v1066_v57, 4  ;;  %v1140_v12 = vadd.f32 %v1139_v28, %v1104_v6  ;;  %v2101_v6 = vld [vmem:[%s3238_s13 + $0x78] sm:$0xff] }
 0x44d   :  { %1499 = vmatpush.bf16.msrb.mxu2 %v2101_v6  ;;  %v2095_v6 = vld [vmem:[%s3238_s13 + $0x48] sm:$0xff] }
 0x44e   :  { %v1068_v40 = vadd.f32 %v1067_v35, %v1066_v57  ;;  %v1141_v18 = vrot.slane %v1140_v12, 4 }
 0x44f   :  { %v2978_v62 = vpop.f32.mrf.mxu3 }
 0x450   :  { %v1069_v33 = vrot.slane %v1068_v40, 2  ;;  %v1142_v19 = vadd.f32 %v1141_v18, %v1140_v12  ;;  %v1045_v21 = vadd.f32 %v1044_v15, %v2978_v62  ;;  %v1103_v49 = vmul.f32 %v2978_v62, %v2978_v62 }
 0x452   :  { %v1070_v22 = vadd.f32 %v1069_v33, %v1068_v40  ;;  %v1143_v23 = vrot.slane %v1142_v19, 2  ;;  %v1046_v53 = vrot.slane %v1045_v21, 4  ;;  %v1119_v50 = vadd.f32 %v1118_v8, %v1103_v49  ;;  %v2100_v40 = vld [vmem:[%s3238_s13 + $0x70] sm:$0xff] }
 0x453   :  { %1500 = vmatpush.bf16.msrb.mxu2 %v2100_v40 }
 0x454   :  { %v1071_v25 = vrot.slane %v1070_v22, 1  ;;  %v1144_v36 = vadd.f32 %v1143_v23, %v1142_v19  ;;  %v1047_v59 = vadd.f32 %v1046_v53, %v1045_v21  ;;  %v1120_v16 = vrot.slane %v1119_v50, 4 }
 0x456   :  { %v1072_v1 = vadd.f32 %v1071_v25, %v1070_v22  ;;  %v1145_v2 = vrot.slane %v1144_v36, 1  ;;  %v1048_v4 = vrot.slane %v1047_v59, 2  ;;  %v1121_v30 = vadd.f32 %v1120_v16, %v1119_v50  ;;  %v2099_v22 = vld [vmem:[%s3238_s13 + $0x68] sm:$0xff]  ;;  %v2090_v50 = vld [vmem:[%s3238_s13 + $0x20] sm:$0xff]  ;;  %v2097_v16 = vld [vmem:[%s3238_s13 + $0x58] sm:$0xff] }
 0x457   :  { %1501 = vmatpush.bf16.msrb.mxu2 %v2099_v22  ;;  %v2098_v25 = vld [vmem:[%s3238_s13 + $0x60] sm:$0xff]  ;;  %1453 = vmatpush.bf16.msrb.mxu1 %v2090_v50 }
 0x458   :  { %v1146_v24 = vadd.f32 %v1145_v2, %v1144_v36  ;;  %v2986_v20 = vmul.f32 0.0078125, %v1072_v1  ;;  %v1049_v28 = vadd.f32 %v1048_v4, %v1047_v59  ;;  %v1122_v57 = vrot.slane %v1121_v30, 2  ;;  %v2089_v59 = vld [vmem:[%s3238_s13 + $0x18] sm:$0xff]  ;;  %v2088_v2 = vld [vmem:[%s3238_s13 + $0x10] sm:$0xff] }
 0x45a   :  { %v1150_v51 = vmul.f32 0.0078125, %v1146_v24  ;;  %v1152_v10 = vmul.f32 %v2986_v20, %v2986_v20  ;;  %v1050_v34 = vrot.slane %v1049_v28, 1  ;;  %v1123_v35 = vadd.f32 %v1122_v57, %v1121_v30  ;;  %v2096_v30 = vld [vmem:[%s3238_s13 + $0x50] sm:$0xff]  ;;  %v2087_v57 = vld [vmem:[%s3238_s13 + $0x8] sm:$0xff] }
 0x45b   :  { %1502 = vmatpush.bf16.msrb.mxu2 %v2098_v25  ;;  %1454 = vmatpush.bf16.msrb.mxu1 %v2089_v59 }
 0x45c   :  { %v1154_v12 = vsub.f32 %v1150_v51, %v1152_v10  ;;  %v1051_v63 = vadd.f32 %v1050_v34, %v1049_v28  ;;  %v1124_v15 = vrot.slane %v1123_v35, 1 }
 0x45e   :  { %v1156_v18 = vmax.f32 %v1154_v12, 0.0  ;;  %v1125_v8 = vadd.f32 %v1124_v15, %v1123_v35  ;;  %v2996_v33 = vmul.f32 0.0078125, %v1051_v63  ;;  %v2086_v12 = vld [vmem:[%s3238_s13] sm:$0xff] }
 0x45f   :  { %1503 = vmatpush.bf16.msrb.mxu2 %v2097_v16  ;;  %1455 = vmatpush.bf16.msrb.mxu1 %v2088_v2  ;;  %v2094_v63 = vld [vmem:[%s3238_s13 + $0x40] sm:$0xff] }
 0x460   :  { %v1159_v19 = vadd.f32 1e-05, %v1156_v18  ;;  %v1149_v21 = vmul.f32 0.0078125, %v1125_v8  ;;  %v1151_v49 = vmul.f32 %v2996_v33, %v2996_v33 }
 0x462   :  { %2116 = vrsqrt.f32 %v1159_v19  ;;  %v1153_v23 = vsub.f32 %v1149_v21, %v1151_v49  ;;  %vm1176_vm14 = vweird.f32 %v1159_v19  ;;  %v1157_v49 = vld [vmem:[%s3239_s11] sm:$0x3] }
 0x463   :  { %1504 = vmatpush.bf16.msrb.mxu2 %v2096_v30  ;;  %1456 = vmatpush.bf16.msrb.mxu1 %v2087_v57 }
 0x464   :  { %v1155_v53 = vmax.f32 %v1153_v23, 0.0 }
 0x466   :  { %v1158_v36 = vadd.f32 1e-05, %v1155_v53 }
 0x467   :  { %1505 = vmatpush.bf16.msrb.mxu2 %v2095_v6  ;;  %1457 = vmatpush.bf16.msrb.mxu1 %v2086_v12 }
 0x468   :  { %v2117_v56 = vpop.eup %2116  ;;  %2118 = vrsqrt.f32 %v1158_v36  ;;  %vm1166_vm1 = vweird.f32 %v1158_v36 }
 0x469   :  { %v1171_v1 = vmul.f32 %v2117_v56, %v1159_v19  ;;  %vm1177_vm13 = vweird.f32 %v2117_v56 }
 0x46a   :  { %vm1178_vm15 = vmor %vm1176_vm14, %vm1177_vm13 }
 0x46b   :  { %v1172_v4 = vmul.f32 %v2117_v56, %v1171_v1  ;;  %1506 = vmatpush.bf16.msrb.mxu2 %v2094_v63 }
 0x46d   :  { %v1173_v24 = vmul.f32 0.5, %v1172_v4 }
 0x46e   :  { %v2119_v28 = vpop.eup %2118 }
 0x46f   :  { %v1174_v51 = vsub.f32 1.5, %v1173_v24  ;;  %v1161_v10 = vmul.f32 %v2119_v28, %v1158_v36  ;;  %vm1167_vm0 = vweird.f32 %v2119_v28 }
 0x470   :  { %vm1168_vm3 = vmor %vm1166_vm1, %vm1167_vm0 }
 0x471   :  { %v1175_v34 = vmul.f32 %v2117_v56, %v1174_v51  ;;  %v1162_v35 = vmul.f32 %v2119_v28, %v1161_v10 }
 0x473   :  { %v1163_v15 = vmul.f32 0.5, %v1162_v35  ;;  %v1179_v40 = vsel %vm1178_vm15, %v2117_v56, %v1175_v34  ;;  %v1187_v56 = vld [vmem:[%s3240_s12] sm:$0x3] }
 0x474   :  { %v1182_v21 = vrot.slane %v1179_v40, 7 }
 0x475   :  { %v1164_v18 = vsub.f32 1.5, %v1163_v15 }
 0x477   :  { %v1165_v8 = vmul.f32 %v2119_v28, %v1164_v18 }
 0x479   :  { %v1169_v22 = vsel %vm1168_vm3, %v2119_v28, %v1165_v8 }
 0x47a   :  { %v1184_v23 = vsel %vm1183_vm2, %v1169_v22, %v1182_v21 }
 0x47b   :  { %v1186_v19 = vmul.f32 %v1184_v23, %v1157_v49 }
 0x47d   :  { %v3037_v53 = vperm.slane %v1186_v19, 0  ;;  %v3039_v50 = vperm.slane %v1186_v19, 1 }
 0x47f   :  { %v1194_v25 = vmul.f32 %v3039_v50, %v2986_v20  ;;  %v1231_v36 = vmul.f32 %v3037_v53, %v2978_v62  ;;  %v1193_v59 = vmul.f32 %v3037_v53, %v2996_v33  ;;  %v1201_v4 = vmul.f32 %v3037_v53, %v2819_v27 }
 0x480   :  { %v1203_v62 = vmul.f32 %v3037_v53, %v2823_v11  ;;  %v1202_v24 = vmul.f32 %v3039_v50, %v2817_v54  ;;  %v1204_v33 = vmul.f32 %v3039_v50, %v2821_v5  ;;  %v1205_v54 = vmul.f32 %v3037_v53, %v2827_v38 }
 0x481   :  { %v1197_v16 = vrot.slane %v1194_v25, 7  ;;  %v1207_v5 = vmul.f32 %v3037_v53, %v2831_v41  ;;  %v1206_v63 = vmul.f32 %v3039_v50, %v2825_v37  ;;  %v1208_v40 = vmul.f32 %v3039_v50, %v2829_v39 }
 0x482   :  { %v1217_v18 = vmul.f32 %v3037_v53, %v2854_v45  ;;  %v1219_v8 = vmul.f32 %v3037_v53, %v2861_v48  ;;  %v1218_v41 = vmul.f32 %v3039_v50, %v2849_v52  ;;  %v1220_v37 = vmul.f32 %v3039_v50, %v2856_v58 }
 0x483   :  { %v1198_v1 = vsel %vm1183_vm2, %v1193_v59, %v1197_v16  ;;  %v1221_v45 = vmul.f32 %v3037_v53, %v2865_v61  ;;  %v1223_v48 = vmul.f32 %v3037_v53, %v2877_v17  ;;  %v1222_v49 = vmul.f32 %v3039_v50, %v2863_v60 }
 0x484   :  { %v1200_v2 = vsub.f32 %v1187_v56, %v1198_v1  ;;  %v1224_v52 = vmul.f32 %v3039_v50, %v2867_v9  ;;  %v1225_v58 = vmul.f32 %v3037_v53, %v2906_v31  ;;  %v1227_v23 = vmul.f32 %v3037_v53, %v2934_v7 }
 0x485   :  { %v1226_v17 = vmul.f32 %v3039_v50, %v2884_v43  ;;  %v1228_v60 = vmul.f32 %v3039_v50, %v2914_v29 }
 0x486   :  { %v3053_v30 = vperm.slane %v1200_v2, 0  ;;  %v3055_v20 = vperm.slane %v1200_v2, 1 }
 0x488   :  { %v3064_v28 = vadd.f32 %v3053_v30, %v1231_v36  ;;  %v1238_v57 = vadd.f32 %v3053_v30, %v1201_v4  ;;  %v1240_v27 = vadd.f32 %v3053_v30, %v1203_v62  ;;  %v1239_v6 = vadd.f32 %v3055_v20, %v1202_v24 }
 0x489   :  { %v1241_v51 = vadd.f32 %v3055_v20, %v1204_v33  ;;  %v1242_v21 = vadd.f32 %v3053_v30, %v1205_v54  ;;  %v1244_v38 = vadd.f32 %v3053_v30, %v1207_v5  ;;  %v1243_v39 = vadd.f32 %v3055_v20, %v1206_v63 }
 0x48a   :  { %v1270_v10 = vmax.f32 %v1238_v57, 0.0  ;;  %v1272_v34 = vmax.f32 %v1240_v27, 0.0  ;;  %v1271_v11 = vmax.f32 %v1239_v6, 0.0  ;;  %v1245_v22 = vadd.f32 %v3055_v20, %v1208_v40 }
 0x48b   :  { %v1273_v35 = vmax.f32 %v1241_v51, 0.0  ;;  %v1254_v19 = vadd.f32 %v3053_v30, %v1217_v18  ;;  %v1256_v61 = vadd.f32 %v3053_v30, %v1219_v8  ;;  %v1274_v25 = vmax.f32 %v1242_v21, 0.0 }
 0x48c   :  { %v1302_v12 = vpack.c.bf16 %v1272_v34, %v1270_v10  ;;  %v1276_v36 = vmax.f32 %v1244_v38, 0.0  ;;  %v1255_v9 = vadd.f32 %v3055_v20, %v1218_v41  ;;  %v1257_v56 = vadd.f32 %v3055_v20, %v1220_v37 }
 0x48d   :  { %v1303_v15 = vpack.c.bf16 %v1273_v35, %v1271_v11  ;;  %v1275_v31 = vmax.f32 %v1243_v39, 0.0  ;;  %v1286_v59 = vmax.f32 %v1254_v19, 0.0  ;;  %v1288_v16 = vmax.f32 %v1256_v61, 0.0 }
 0x48e   :  { %1458 = vmatmul.bf16.vlgmr.msrb.gmra.mxu1 %v1302_v12  ;;  %v1258_v7 = vadd.f32 %v3053_v30, %v1221_v45  ;;  %v1277_v1 = vmax.f32 %v1245_v22, 0.0  ;;  %v1287_v2 = vmax.f32 %v1255_v9, 0.0  ;;  %v1289_v4 = vmax.f32 %v1257_v56, 0.0 }
 0x48f   :  { %1507 = vmatmul.bf16.vlgmr.msrb.gmra.mxu2 %v1303_v15  ;;  %v1260_v62 = vadd.f32 %v3053_v30, %v1223_v48  ;;  %v3112_v43 = vpack.c.bf16 %v1288_v16, %v1286_v59  ;;  %v1259_v29 = vadd.f32 %v3055_v20, %v1222_v49  ;;  %v1261_v33 = vadd.f32 %v3055_v20, %v1224_v52 }
 0x490   :  { %v1290_v24 = vmax.f32 %v1258_v7, 0.0  ;;  %v3116_v57 = vpack.c.bf16 %v1289_v4, %v1287_v2  ;;  %v1262_v6 = vadd.f32 %v3053_v30, %v1225_v58  ;;  %v1264_v51 = vadd.f32 %v3053_v30, %v1227_v23 }
 0x491   :  { %v1292_v27 = vmax.f32 %v1260_v62, 0.0  ;;  %v1291_v10 = vmax.f32 %v1259_v29, 0.0  ;;  %v1293_v34 = vmax.f32 %v1261_v33, 0.0  ;;  %v1263_v11 = vadd.f32 %v3055_v20, %v1226_v17 }
 0x492   :  { %v1265_v35 = vadd.f32 %v3055_v20, %v1228_v60  ;;  %v1294_v54 = vmax.f32 %v1262_v6, 0.0  ;;  %v1296_v5 = vmax.f32 %v1264_v51, 0.0  ;;  %v1229_v63 = vmul.f32 %v3037_v53, %v2962_v0 }
 0x493   :  { %v1312_v12 = vpack.c.bf16 %v1292_v27, %v1290_v24  ;;  %v1313_v15 = vpack.c.bf16 %v1293_v34, %v1291_v10  ;;  %v1295_v40 = vmax.f32 %v1263_v11, 0.0  ;;  %v1230_v8 = vmul.f32 %v3039_v50, %v2942_v13 }
 0x494   :  { %v1297_v18 = vmax.f32 %v1265_v35, 0.0  ;;  %v1300_v21 = vmax.f32 %v3064_v28, 0.0  ;;  %v1314_v38 = vpack.c.bf16 %v1296_v5, %v1294_v54  ;;  %v1266_v41 = vadd.f32 %v3053_v30, %v1229_v63 }
 0x495   :  { %v1232_v37 = vmul.f32 %v3039_v50, %v2968_v26  ;;  %v1267_v45 = vadd.f32 %v3055_v20, %v1230_v8  ;;  %v1304_v48 = vpack.c.bf16 %v1276_v36, %v1274_v25  ;;  %v1305_v22 = vpack.c.bf16 %v1277_v1, %v1275_v31 }
 0x496   :  { %v1315_v39 = vpack.c.bf16 %v1297_v18, %v1295_v40  ;;  %v1298_v49 = vmax.f32 %v1266_v41, 0.0  ;;  %v1209_v23 = vmul.f32 %v3037_v53, %v2835_v42  ;;  %v1211_v26 = vmul.f32 %v3037_v53, %v2839_v44 }
 0x497   :  { %v1269_v0 = vadd.f32 %v3055_v20, %v1232_v37  ;;  %v1299_v52 = vmax.f32 %v1267_v45, 0.0  ;;  %v1210_v19 = vmul.f32 %v3039_v50, %v2833_v14  ;;  %v1212_v61 = vmul.f32 %v3039_v50, %v2837_v3 }
 0x498   :  { %v1316_v58 = vpack.c.bf16 %v1300_v21, %v1298_v49  ;;  %v1246_v17 = vadd.f32 %v3053_v30, %v1209_v23  ;;  %v1248_v60 = vadd.f32 %v3053_v30, %v1211_v26  ;;  %v1213_v14 = vmul.f32 %v3037_v53, %v2843_v55 }
 0x499   :  { %v1301_v13 = vmax.f32 %v1269_v0, 0.0  ;;  %v1247_v25 = vadd.f32 %v3055_v20, %v1210_v19  ;;  %v1249_v36 = vadd.f32 %v3055_v20, %v1212_v61  ;;  %v1215_v3 = vmul.f32 %v3037_v53, %v2847_v32 }
 0x49a   :  { %v1278_v9 = vmax.f32 %v1246_v17, 0.0  ;;  %v1280_v56 = vmax.f32 %v1248_v60, 0.0  ;;  %v1214_v16 = vmul.f32 %v3039_v50, %v2841_v46  ;;  %v1216_v7 = vmul.f32 %v3039_v50, %v2845_v47  ;;  %v3161_v47 = vld [vmem:[%s3241_s14] ss:$0 sm:$0xff] }
 0x49b   :  { %v1317_v28 = vpack.c.bf16 %v1301_v13, %v1299_v52  ;;  %v1279_v42 = vmax.f32 %v1247_v25, 0.0  ;;  %v1281_v31 = vmax.f32 %v1249_v36, 0.0  ;;  %v1250_v1 = vadd.f32 %v3053_v30, %v1213_v14 }
 0x49c   :  { %v1306_v59 = vpack.c.bf16 %v1280_v56, %v1278_v9  ;;  %v1252_v2 = vadd.f32 %v3053_v30, %v1215_v3  ;;  %v1251_v4 = vadd.f32 %v3055_v20, %v1214_v16  ;;  %v1253_v62 = vadd.f32 %v3055_v20, %v1216_v7 }
 0x49d   :  { %v1307_v44 = vpack.c.bf16 %v1281_v31, %v1279_v42  ;;  %v1282_v24 = vmax.f32 %v1250_v1, 0.0 }
 0x49e   :  { %1463 = vmatmul.bf16.gmra.mxu1 %v1304_v48  ;;  %v1284_v29 = vmax.f32 %v1252_v2, 0.0  ;;  %v1283_v55 = vmax.f32 %v1251_v4, 0.0  ;;  %v1285_v33 = vmax.f32 %v1253_v62, 0.0 }
 0x49f   :  { %1512 = vmatmul.bf16.gmra.mxu2 %v1305_v22 }
 0x4a0   :  { %v1308_v27 = vpack.c.bf16 %v1284_v29, %v1282_v24  ;;  %v1309_v32 = vpack.c.bf16 %v1285_v33, %v1283_v55 }
 0x4ae   :  { %1468 = vmatmul.bf16.gmra.mxu1 %v1306_v59 }
 0x4af   :  { %1517 = vmatmul.bf16.gmra.mxu2 %v1307_v44 }
 0x4be   :  { %1473 = vmatmul.bf16.gmra.mxu1 %v1308_v27 }
 0x4bf   :  { %1522 = vmatmul.bf16.gmra.mxu2 %v1309_v32 }
 0x4ce   :  { %1478 = vmatmul.bf16.gmra.mxu1 %v3112_v43 }
 0x4cf   :  { %1527 = vmatmul.bf16.gmra.mxu2 %v3116_v57 }
 0x4de   :  { %1483 = vmatmul.bf16.gmra.mxu1 %v1312_v12 }
 0x4df   :  { %1532 = vmatmul.bf16.gmra.mxu2 %v1313_v15 }
 0x4ee   :  { %1488 = vmatmul.bf16.gmra.mxu1 %v1314_v38 }
 0x4ef   :  { %1537 = vmatmul.bf16.gmra.mxu2 %v1315_v39 }
 0x4fe   :  { %1493 = vmatmul.bf16.gmra.mxu1 %v1316_v58 }
 0x4ff   :  { %1542 = vmatmul.bf16.gmra.mxu2 %v1317_v28 }
 0x50b   :  { %v1459_v46 = vpop.f32.mrf.mxu1 }
 0x50c   :  { %v1460_v53 = vadd.f32 %v3161_v47, %v1459_v46 }
 0x512   :  { %v1508_v50 = vpop.f32.mrf.mxu2 }
 0x513   :  { %v1509_v30 = vadd.f32 %v1508_v50, %v1460_v53  ;;  %v1461_v20 = vpop.f32.mrf.mxu1 }
 0x514   :  { %v1462_v57 = vadd.f32 %v3161_v47, %v1461_v20 }
 0x515   :  { %v2048_v43 = vmul.f32 -1.442695, %v1509_v30 }
 0x517   :  { %2120 = vpow2.f32 %v2048_v43 }
 0x51a   :  { %v1510_v6 = vpop.f32.mrf.mxu2 }
 0x51b   :  { %v1511_v51 = vadd.f32 %v1510_v6, %v1462_v57  ;;  %v1464_v10 = vpop.f32.mrf.mxu1 }
 0x51c   :  { %v1465_v12 = vadd.f32 %v3161_v47, %v1464_v10 }
 0x51d   :  { %v2121_v34 = vpop.eup %2120  ;;  %v2049_v11 = vmul.f32 -1.442695, %v1511_v51 }
 0x51e   :  { %v1596_v35 = vadd.f32 1.0, %v2121_v34 }
 0x51f   :  { %2122 = vpow2.f32 %v2049_v11 }
 0x520   :  { %2124 = vrcp.f32 %v1596_v35  ;;  %v1623_v37 = vand.u32 2147483648, %v1596_v35  ;;  %v1621_v48 = vand.u32 2147483647, %v1596_v35  ;;  %vm1617_vm5 = vweird.f32 %v1596_v35 }
 0x522   :  { %v1513_v54 = vpop.f32.mrf.mxu2  ;;  %v1624_v28 = vor.u32 1.1754944e-38, %v1623_v37  ;;  %vm1622_vm7 = vcmp.eq.f32.partialorder %v1621_v48, 8.507059e+37 }
 0x523   :  { %v1514_v5 = vadd.f32 %v1513_v54, %v1465_v12  ;;  %v1466_v63 = vpop.f32.mrf.mxu1 }
 0x524   :  { %v1467_v41 = vadd.f32 %v3161_v47, %v1466_v63 }
 0x525   :  { %v2123_v15 = vpop.eup %2122  ;;  %v2050_v40 = vmul.f32 -1.442695, %v1514_v5 }
 0x526   :  { %v2125_v18 = vpop.eup %2124  ;;  %v1597_v8 = vadd.f32 1.0, %v2123_v15 }
 0x527   :  { %v1613_v21 = vmul.f32 %v2125_v18, %v1596_v35  ;;  %2126 = vpow2.f32 %v2050_v40  ;;  %vm1618_vm4 = vweird.f32 %v2125_v18 }
 0x528   :  { %2128 = vrcp.f32 %v1597_v8  ;;  %vm1619_vm6 = vmor %vm1617_vm5, %vm1618_vm4  ;;  %v1638_v25 = vand.u32 2147483648, %v1597_v8  ;;  %v1636_v56 = vand.u32 2147483647, %v1597_v8  ;;  %vm1632_vm9 = vweird.f32 %v1597_v8 }
 0x529   :  { %v1614_v38 = vsub.f32 1.0, %v1613_v21 }
 0x52a   :  { %v1515_v39 = vpop.f32.mrf.mxu2  ;;  %v1639_v16 = vor.u32 1.1754944e-38, %v1638_v25  ;;  %vm1637_vm11 = vcmp.eq.f32.partialorder %v1636_v56, 8.507059e+37 }
 0x52b   :  { %v1615_v45 = vmul.f32 %v2125_v18, %v1614_v38  ;;  %v1516_v49 = vadd.f32 %v1515_v39, %v1467_v41  ;;  %v1469_v0 = vpop.f32.mrf.mxu1 }
 0x52c   :  { %v1470_v60 = vadd.f32 %v3161_v47, %v1469_v0 }
 0x52d   :  { %v2127_v22 = vpop.eup %2126  ;;  %v1616_v52 = vadd.f32 %v2125_v18, %v1615_v45  ;;  %v2051_v58 = vmul.f32 -1.442695, %v1516_v49 }
 0x52e   :  { %v2129_v13 = vpop.eup %2128  ;;  %v1598_v23 = vadd.f32 1.0, %v2127_v22 }
 0x52f   :  { %v1620_v26 = vsel %vm1619_vm6, %v2125_v18, %v1616_v52  ;;  %v1628_v19 = vmul.f32 %v2129_v13, %v1597_v8  ;;  %2130 = vpow2.f32 %v2051_v58  ;;  %vm1633_vm8 = vweird.f32 %v2129_v13 }
 0x530   :  { %v1625_v61 = vsel %vm1622_vm7, %v1624_v28, %v1620_v26  ;;  %2132 = vrcp.f32 %v1598_v23  ;;  %vm1634_vm10 = vmor %vm1632_vm9, %vm1633_vm8  ;;  %v1653_v29 = vand.u32 2147483648, %v1598_v23  ;;  %v1651_v27 = vand.u32 2147483647, %v1598_v23 }
 0x531   :  { %1852 = vst [vmem:[%s3242_s15] sm:$0xff] %v1625_v61  ;;  %v1629_v17 = vsub.f32 1.0, %v1628_v19  ;;  %vm1647_vm13 = vweird.f32 %v1598_v23 }
 0x532   :  { %v1518_v36 = vpop.f32.mrf.mxu2  ;;  %v1654_v43 = vor.u32 1.1754944e-38, %v1653_v29  ;;  %vm1652_vm15 = vcmp.eq.f32.partialorder %v1651_v27, 8.507059e+37 }
 0x533   :  { %v1630_v9 = vmul.f32 %v2129_v13, %v1629_v17  ;;  %v1519_v42 = vadd.f32 %v1518_v36, %v1470_v60  ;;  %v1471_v31 = vpop.f32.mrf.mxu1 }
 0x534   :  { %v1472_v24 = vadd.f32 %v3161_v47, %v1471_v31 }
 0x535   :  { %v2131_v59 = vpop.eup %2130  ;;  %v1631_v44 = vadd.f32 %v2129_v13, %v1630_v9  ;;  %v2052_v14 = vmul.f32 -1.442695, %v1519_v42 }
 0x536   :  { %v2133_v3 = vpop.eup %2132  ;;  %v1599_v7 = vadd.f32 1.0, %v2131_v59 }
 0x537   :  { %v1635_v1 = vsel %vm1634_vm10, %v2129_v13, %v1631_v44  ;;  %v1643_v2 = vmul.f32 %v2133_v3, %v1598_v23  ;;  %2134 = vpow2.f32 %v2052_v14  ;;  %vm1648_vm12 = vweird.f32 %v2133_v3 }
 0x538   :  { %v1640_v4 = vsel %vm1637_vm11, %v1639_v16, %v1635_v1  ;;  %2136 = vrcp.f32 %v1599_v7  ;;  %vm1649_vm14 = vmor %vm1647_vm13, %vm1648_vm12  ;;  %v1668_v35 = vand.u32 2147483648, %v1599_v7  ;;  %v1666_v5 = vand.u32 2147483647, %v1599_v7 }
 0x539   :  { %1853 = vst [vmem:[%s3242_s15 + $0x8] sm:$0xff] %v1640_v4  ;;  %v1644_v62 = vsub.f32 1.0, %v1643_v2  ;;  %vm1662_vm1 = vweird.f32 %v1599_v7 }
 0x53a   :  { %v1520_v55 = vpop.f32.mrf.mxu2  ;;  %v1669_v38 = vor.u32 1.1754944e-38, %v1668_v35  ;;  %vm1667_vm3 = vcmp.eq.f32.partialorder %v1666_v5, 8.507059e+37 }
 0x53b   :  { %v1645_v33 = vmul.f32 %v2133_v3, %v1644_v62  ;;  %v1521_v32 = vadd.f32 %v1520_v55, %v1472_v24  ;;  %v1474_v46 = vpop.f32.mrf.mxu1 }
 0x53c   :  { %v1475_v11 = vadd.f32 %v3161_v47, %v1474_v46 }
 0x53d   :  { %v2135_v53 = vpop.eup %2134  ;;  %v1646_v50 = vadd.f32 %v2133_v3, %v1645_v33  ;;  %v2053_v30 = vmul.f32 -1.442695, %v1521_v32 }
 0x53e   :  { %v2137_v20 = vpop.eup %2136  ;;  %v1600_v57 = vadd.f32 1.0, %v2135_v53 }
 0x53f   :  { %v1650_v6 = vsel %vm1649_vm14, %v2133_v3, %v1646_v50  ;;  %v1658_v51 = vmul.f32 %v2137_v20, %v1599_v7  ;;  %2138 = vpow2.f32 %v2053_v30  ;;  %vm1663_vm0 = vweird.f32 %v2137_v20 }
 0x540   :  { %v1655_v10 = vsel %vm1652_vm15, %v1654_v43, %v1650_v6  ;;  %2140 = vrcp.f32 %v1600_v57  ;;  %vm1664_vm2 = vmor %vm1662_vm1, %vm1663_vm0  ;;  %v1683_v0 = vand.u32 2147483648, %v1600_v57  ;;  %v1681_v58 = vand.u32 2147483647, %v1600_v57 }
 0x541   :  { %1854 = vst [vmem:[%s3242_s15 + $0x10] sm:$0xff] %v1655_v10  ;;  %v1659_v34 = vsub.f32 1.0, %v1658_v51  ;;  %vm1677_vm5 = vweird.f32 %v1600_v57 }
 0x542   :  { %v1523_v12 = vpop.f32.mrf.mxu2  ;;  %v1684_v17 = vor.u32 1.1754944e-38, %v1683_v0  ;;  %vm1682_vm7 = vcmp.eq.f32.partialorder %v1681_v58, 8.507059e+37 }
 0x543   :  { %v1660_v54 = vmul.f32 %v2137_v20, %v1659_v34  ;;  %v1524_v63 = vadd.f32 %v1523_v12, %v1475_v11  ;;  %v1476_v15 = vpop.f32.mrf.mxu1 }
 0x544   :  { %v1477_v49 = vadd.f32 %v3161_v47, %v1476_v15 }
 0x545   :  { %v2139_v40 = vpop.eup %2138  ;;  %v1661_v18 = vadd.f32 %v2137_v20, %v1660_v54  ;;  %v2054_v8 = vmul.f32 -1.442695, %v1524_v63 }
 0x546   :  { %v2141_v21 = vpop.eup %2140  ;;  %v1601_v41 = vadd.f32 1.0, %v2139_v40 }
 0x547   :  { %v1665_v37 = vsel %vm1664_vm2, %v2137_v20, %v1661_v18  ;;  %v1673_v39 = vmul.f32 %v2141_v21, %v1600_v57  ;;  %2142 = vpow2.f32 %v2054_v8  ;;  %vm1678_vm4 = vweird.f32 %v2141_v21 }
 0x548   :  { %v1670_v45 = vsel %vm1667_vm3, %v1669_v38, %v1665_v37  ;;  %2144 = vrcp.f32 %v1601_v41  ;;  %vm1679_vm6 = vmor %vm1677_vm5, %vm1678_vm4  ;;  %v1698_v31 = vand.u32 2147483648, %v1601_v41  ;;  %v1696_v14 = vand.u32 2147483647, %v1601_v41 }
 0x549   :  { %1855 = vst [vmem:[%s3242_s15 + $0x18] sm:$0xff] %v1670_v45  ;;  %v1674_v48 = vsub.f32 1.0, %v1673_v39  ;;  %vm1692_vm9 = vweird.f32 %v1601_v41 }
 0x54a   :  { %v1525_v22 = vpop.f32.mrf.mxu2  ;;  %v1699_v62 = vor.u32 1.1754944e-38, %v1698_v31  ;;  %vm1697_vm11 = vcmp.eq.f32.partialorder %v1696_v14, 8.507059e+37 }
 0x54b   :  { %v1675_v52 = vmul.f32 %v2141_v21, %v1674_v48  ;;  %v1526_v13 = vadd.f32 %v1525_v22, %v1477_v49  ;;  %v1479_v28 = vpop.f32.mrf.mxu1 }
 0x54c   :  { %v1480_v42 = vadd.f32 %v3161_v47, %v1479_v28 }
 0x54d   :  { %v2143_v23 = vpop.eup %2142  ;;  %v1676_v26 = vadd.f32 %v2141_v21, %v1675_v52  ;;  %v2055_v19 = vmul.f32 -1.442695, %v1526_v13 }
 0x54e   :  { %v2145_v61 = vpop.eup %2144  ;;  %v1602_v60 = vadd.f32 1.0, %v2143_v23 }
 0x54f   :  { %v1680_v25 = vsel %vm1679_vm6, %v2141_v21, %v1676_v26  ;;  %v1688_v36 = vmul.f32 %v2145_v61, %v1601_v41  ;;  %2146 = vpow2.f32 %v2055_v19  ;;  %vm1693_vm8 = vweird.f32 %v2145_v61 }
 0x550   :  { %v1685_v9 = vsel %vm1682_vm7, %v1684_v17, %v1680_v25  ;;  %2148 = vrcp.f32 %v1602_v60  ;;  %vm1694_vm10 = vmor %vm1692_vm9, %vm1693_vm8  ;;  %v1713_v46 = vand.u32 2147483648, %v1602_v60  ;;  %v1711_v30 = vand.u32 2147483647, %v1602_v60 }
 0x551   :  { %1856 = vst [vmem:[%s3242_s15 + $0x20] sm:$0xff] %v1685_v9  ;;  %v1689_v56 = vsub.f32 1.0, %v1688_v36  ;;  %vm1707_vm13 = vweird.f32 %v1602_v60 }
 0x552   :  { %v1528_v59 = vpop.f32.mrf.mxu2  ;;  %v1714_v34 = vor.u32 1.1754944e-38, %v1713_v46  ;;  %vm1712_vm15 = vcmp.eq.f32.partialorder %v1711_v30, 8.507059e+37 }
 0x553   :  { %v1690_v44 = vmul.f32 %v2145_v61, %v1689_v56  ;;  %v1529_v3 = vadd.f32 %v1528_v59, %v1480_v42  ;;  %v1481_v16 = vpop.f32.mrf.mxu1 }
 0x554   :  { %v1482_v32 = vadd.f32 %v3161_v47, %v1481_v16 }
 0x555   :  { %v2147_v7 = vpop.eup %2146  ;;  %v1691_v1 = vadd.f32 %v2145_v61, %v1690_v44  ;;  %v2056_v2 = vmul.f32 -1.442695, %v1529_v3 }
 0x556   :  { %v2149_v4 = vpop.eup %2148  ;;  %v1603_v24 = vadd.f32 1.0, %v2147_v7 }
 0x557   :  { %v1695_v29 = vsel %vm1694_vm10, %v2145_v61, %v1691_v1  ;;  %v1703_v55 = vmul.f32 %v2149_v4, %v1602_v60  ;;  %2150 = vpow2.f32 %v2056_v2  ;;  %vm1708_vm12 = vweird.f32 %v2149_v4 }
 0x558   :  { %v1700_v33 = vsel %vm1697_vm11, %v1699_v62, %v1695_v29  ;;  %2152 = vrcp.f32 %v1603_v24  ;;  %vm1709_vm14 = vmor %vm1707_vm13, %vm1708_vm12  ;;  %v1728_v15 = vand.u32 2147483648, %v1603_v24  ;;  %v1726_v8 = vand.u32 2147483647, %v1603_v24 }
 0x559   :  { %1857 = vst [vmem:[%s3242_s15 + $0x28] sm:$0xff] %v1700_v33  ;;  %v1704_v27 = vsub.f32 1.0, %v1703_v55  ;;  %vm1722_vm1 = vweird.f32 %v1603_v24 }
 0x55a   :  { %v1530_v53 = vpop.f32.mrf.mxu2  ;;  %v1729_v48 = vor.u32 1.1754944e-38, %v1728_v15  ;;  %vm1727_vm3 = vcmp.eq.f32.partialorder %v1726_v8, 8.507059e+37 }
 0x55b   :  { %v1705_v50 = vmul.f32 %v2149_v4, %v1704_v27  ;;  %v1531_v20 = vadd.f32 %v1530_v53, %v1482_v32  ;;  %v1484_v43 = vpop.f32.mrf.mxu1 }
 0x55c   :  { %v1485_v63 = vadd.f32 %v3161_v47, %v1484_v43 }
 0x55d   :  { %v2151_v57 = vpop.eup %2150  ;;  %v1706_v6 = vadd.f32 %v2149_v4, %v1705_v50  ;;  %v2057_v51 = vmul.f32 -1.442695, %v1531_v20 }
 0x55e   :  { %v2153_v10 = vpop.eup %2152  ;;  %v1604_v11 = vadd.f32 1.0, %v2151_v57 }
 0x55f   :  { %v1710_v35 = vsel %vm1709_vm14, %v2149_v4, %v1706_v6  ;;  %v1718_v12 = vmul.f32 %v2153_v10, %v1603_v24  ;;  %2154 = vpow2.f32 %v2057_v51  ;;  %vm1723_vm0 = vweird.f32 %v2153_v10 }
 0x560   :  { %v1715_v54 = vsel %vm1712_vm15, %v1714_v34, %v1710_v35  ;;  %2156 = vrcp.f32 %v1604_v11  ;;  %vm1724_vm2 = vmor %vm1722_vm1, %vm1723_vm0  ;;  %v1743_v28 = vand.u32 2147483648, %v1604_v11  ;;  %v1741_v19 = vand.u32 2147483647, %v1604_v11 }
 0x561   :  { %1858 = vst [vmem:[%s3242_s15 + $0x30] sm:$0xff] %v1715_v54  ;;  %v1719_v5 = vsub.f32 1.0, %v1718_v12  ;;  %vm1737_vm5 = vweird.f32 %v1604_v11 }
 0x562   :  { %v1533_v40 = vpop.f32.mrf.mxu2  ;;  %v1744_v56 = vor.u32 1.1754944e-38, %v1743_v28  ;;  %vm1742_vm7 = vcmp.eq.f32.partialorder %v1741_v19, 8.507059e+37 }
 0x563   :  { %v1720_v18 = vmul.f32 %v2153_v10, %v1719_v5  ;;  %v1534_v21 = vadd.f32 %v1533_v40, %v1485_v63  ;;  %v1486_v38 = vpop.f32.mrf.mxu1 }
 0x564   :  { %v1487_v13 = vadd.f32 %v3161_v47, %v1486_v38 }
 0x565   :  { %v2155_v41 = vpop.eup %2154  ;;  %v1721_v37 = vadd.f32 %v2153_v10, %v1720_v18  ;;  %v2058_v39 = vmul.f32 -1.442695, %v1534_v21 }
 0x566   :  { %v2157_v45 = vpop.eup %2156  ;;  %v1605_v49 = vadd.f32 1.0, %v2155_v41 }
 0x567   :  { %v1725_v0 = vsel %vm1724_vm2, %v2153_v10, %v1721_v37  ;;  %v1733_v22 = vmul.f32 %v2157_v45, %v1604_v11  ;;  %2158 = vpow2.f32 %v2058_v39  ;;  %vm1738_vm4 = vweird.f32 %v2157_v45 }
 0x568   :  { %v1730_v52 = vsel %vm1727_vm3, %v1729_v48, %v1725_v0  ;;  %2160 = vrcp.f32 %v1605_v49  ;;  %vm1739_vm6 = vmor %vm1737_vm5, %vm1738_vm4  ;;  %v1758_v16 = vand.u32 2147483648, %v1605_v49  ;;  %v1756_v2 = vand.u32 2147483647, %v1605_v49 }
 0x569   :  { %1859 = vst [vmem:[%s3242_s15 + $0x38] sm:$0xff] %v1730_v52  ;;  %v1734_v58 = vsub.f32 1.0, %v1733_v22  ;;  %vm1752_vm9 = vweird.f32 %v1605_v49 }
 0x56a   :  { %v1535_v23 = vpop.f32.mrf.mxu2  ;;  %v1759_v27 = vor.u32 1.1754944e-38, %v1758_v16  ;;  %vm1757_vm11 = vcmp.eq.f32.partialorder %v1756_v2, 8.507059e+37 }
 0x56b   :  { %v1735_v26 = vmul.f32 %v2157_v45, %v1734_v58  ;;  %v1536_v61 = vadd.f32 %v1535_v23, %v1487_v13  ;;  %v1489_v17 = vpop.f32.mrf.mxu1 }
 0x56c   :  { %v1490_v3 = vadd.f32 %v3161_v47, %v1489_v17 }
 0x56d   :  { %v2159_v60 = vpop.eup %2158  ;;  %v1736_v25 = vadd.f32 %v2157_v45, %v1735_v26  ;;  %v2059_v36 = vmul.f32 -1.442695, %v1536_v61 }
 0x56e   :  { %v2161_v9 = vpop.eup %2160  ;;  %v1606_v42 = vadd.f32 1.0, %v2159_v60 }
 0x56f   :  { %v1740_v31 = vsel %vm1739_vm6, %v2157_v45, %v1736_v25  ;;  %v1748_v59 = vmul.f32 %v2161_v9, %v1605_v49  ;;  %2162 = vpow2.f32 %v2059_v36  ;;  %vm1753_vm8 = vweird.f32 %v2161_v9 }
 0x570   :  { %v1745_v44 = vsel %vm1742_vm7, %v1744_v56, %v1740_v31  ;;  %2164 = vrcp.f32 %v1606_v42  ;;  %vm1754_vm10 = vmor %vm1752_vm9, %vm1753_vm8  ;;  %v1773_v43 = vand.u32 2147483648, %v1606_v42  ;;  %v1771_v51 = vand.u32 2147483647, %v1606_v42 }
 0x571   :  { %1860 = vst [vmem:[%s3242_s15 + $0x40] sm:$0xff] %v1745_v44  ;;  %v1749_v14 = vsub.f32 1.0, %v1748_v59  ;;  %vm1767_vm13 = vweird.f32 %v1606_v42 }
 0x572   :  { %v1538_v7 = vpop.f32.mrf.mxu2  ;;  %v1774_v5 = vor.u32 1.1754944e-38, %v1773_v43  ;;  %vm1772_vm15 = vcmp.eq.f32.partialorder %v1771_v51, 8.507059e+37 }
 0x573   :  { %v1750_v1 = vmul.f32 %v2161_v9, %v1749_v14  ;;  %v1539_v4 = vadd.f32 %v1538_v7, %v1490_v3  ;;  %v1491_v62 = vpop.f32.mrf.mxu1 }
 0x574   :  { %v1492_v20 = vadd.f32 %v3161_v47, %v1491_v62 }
 0x575   :  { %v2163_v24 = vpop.eup %2162  ;;  %v1751_v29 = vadd.f32 %v2161_v9, %v1750_v1  ;;  %v2060_v55 = vmul.f32 -1.442695, %v1539_v4 }
 0x576   :  { %v2165_v33 = vpop.eup %2164  ;;  %v1607_v32 = vadd.f32 1.0, %v2163_v24 }
 0x577   :  { %v1755_v46 = vsel %vm1754_vm10, %v2161_v9, %v1751_v29  ;;  %v1763_v53 = vmul.f32 %v2165_v33, %v1606_v42  ;;  %2166 = vpow2.f32 %v2060_v55  ;;  %vm1768_vm12 = vweird.f32 %v2165_v33 }
 0x578   :  { %v1760_v50 = vsel %vm1757_vm11, %v1759_v27, %v1755_v46  ;;  %2168 = vrcp.f32 %v1607_v32  ;;  %vm1769_vm14 = vmor %vm1767_vm13, %vm1768_vm12  ;;  %v1788_v38 = vand.u32 2147483648, %v1607_v32  ;;  %v1786_v39 = vand.u32 2147483647, %v1607_v32 }
 0x579   :  { %1861 = vst [vmem:[%s3242_s15 + $0x48] sm:$0xff] %v1760_v50  ;;  %v1764_v30 = vsub.f32 1.0, %v1763_v53  ;;  %vm1782_vm1 = vweird.f32 %v1607_v32 }
 0x57a   :  { %v1540_v57 = vpop.f32.mrf.mxu2  ;;  %v1789_v52 = vor.u32 1.1754944e-38, %v1788_v38  ;;  %vm1787_vm3 = vcmp.eq.f32.partialorder %v1786_v39, 8.507059e+37 }
 0x57b   :  { %v1765_v6 = vmul.f32 %v2165_v33, %v1764_v30  ;;  %v1541_v10 = vadd.f32 %v1540_v57, %v1492_v20  ;;  %v1494_v34 = vpop.f32.mrf.mxu1 }
 0x57c   :  { %v1495_v21 = vadd.f32 %v3161_v47, %v1494_v34 }
 0x57d   :  { %v2167_v11 = vpop.eup %2166  ;;  %v1766_v35 = vadd.f32 %v2165_v33, %v1765_v6  ;;  %v2061_v12 = vmul.f32 -1.442695, %v1541_v10 }
 0x57e   :  { %v2169_v54 = vpop.eup %2168  ;;  %v1608_v63 = vadd.f32 1.0, %v2167_v11 }
 0x57f   :  { %v1770_v15 = vsel %vm1769_vm14, %v2165_v33, %v1766_v35  ;;  %v1778_v40 = vmul.f32 %v2169_v54, %v1607_v32  ;;  %2170 = vpow2.f32 %v2061_v12  ;;  %vm1783_vm0 = vweird.f32 %v2169_v54 }
 0x580   :  { %v1775_v18 = vsel %vm1772_vm15, %v1774_v5, %v1770_v15  ;;  %2172 = vrcp.f32 %v1608_v63  ;;  %vm1784_vm2 = vmor %vm1782_vm1, %vm1783_vm0  ;;  %v1803_v17 = vand.u32 2147483648, %v1608_v63  ;;  %v1801_v36 = vand.u32 2147483647, %v1608_v63 }
 0x581   :  { %1862 = vst [vmem:[%s3242_s15 + $0x50] sm:$0xff] %v1775_v18  ;;  %v1779_v8 = vsub.f32 1.0, %v1778_v40  ;;  %vm1797_vm5 = vweird.f32 %v1608_v63 }
 0x582   :  { %v1543_v41 = vpop.f32.mrf.mxu2  ;;  %v1804_v44 = vor.u32 1.1754944e-38, %v1803_v17  ;;  %vm1802_vm7 = vcmp.eq.f32.partialorder %v1801_v36, 8.507059e+37 }
 0x583   :  { %v1780_v37 = vmul.f32 %v2169_v54, %v1779_v8  ;;  %v1544_v45 = vadd.f32 %v1543_v41, %v1495_v21  ;;  %v1496_v13 = vpop.f32.mrf.mxu1 }
 0x584   :  { %v1497_v61 = vadd.f32 %v3161_v47, %v1496_v13 }
 0x585   :  { %v2171_v48 = vpop.eup %2170  ;;  %v1781_v49 = vadd.f32 %v2169_v54, %v1780_v37  ;;  %v2062_v0 = vmul.f32 -1.442695, %v1544_v45 }
 0x586   :  { %v2173_v22 = vpop.eup %2172  ;;  %v1609_v58 = vadd.f32 1.0, %v2171_v48 }
 0x587   :  { %v1785_v28 = vsel %vm1784_vm2, %v2169_v54, %v1781_v49  ;;  %v1793_v23 = vmul.f32 %v2173_v22, %v1608_v63  ;;  %2174 = vpow2.f32 %v2062_v0  ;;  %vm1798_vm4 = vweird.f32 %v2173_v22 }
 0x588   :  { %v1790_v26 = vsel %vm1787_vm3, %v1789_v52, %v1785_v28  ;;  %2176 = vrcp.f32 %v1609_v58  ;;  %vm1799_vm6 = vmor %vm1797_vm5, %vm1798_vm4  ;;  %v1818_v1 = vand.u32 2147483648, %v1609_v58  ;;  %v1816_v4 = vand.u32 2147483647, %v1609_v58 }
 0x589   :  { %1863 = vst [vmem:[%s3242_s15 + $0x58] sm:$0xff] %v1790_v26  ;;  %v1794_v19 = vsub.f32 1.0, %v1793_v23  ;;  %vm1812_vm9 = vweird.f32 %v1609_v58 }
 0x58a   :  { %v1545_v60 = vpop.f32.mrf.mxu2  ;;  %v1819_v55 = vor.u32 1.1754944e-38, %v1818_v1  ;;  %vm1817_vm11 = vcmp.eq.f32.partialorder %v1816_v4, 8.507059e+37 }
 0x58b   :  { %v1795_v25 = vmul.f32 %v2173_v22, %v1794_v19  ;;  %v1546_v9 = vadd.f32 %v1545_v60, %v1497_v61 }
 0x58d   :  { %v2175_v56 = vpop.eup %2174  ;;  %v1796_v42 = vadd.f32 %v2173_v22, %v1795_v25  ;;  %v2063_v31 = vmul.f32 -1.442695, %v1546_v9 }
 0x58e   :  { %v2177_v59 = vpop.eup %2176  ;;  %v1610_v14 = vadd.f32 1.0, %v2175_v56 }
 0x58f   :  { %v1800_v3 = vsel %vm1799_vm6, %v2173_v22, %v1796_v42  ;;  %v1808_v16 = vmul.f32 %v2177_v59, %v1609_v58  ;;  %2178 = vpow2.f32 %v2063_v31  ;;  %vm1813_vm8 = vweird.f32 %v2177_v59 }
 0x590   :  { %v1805_v7 = vsel %vm1802_vm7, %v1804_v44, %v1800_v3  ;;  %2180 = vrcp.f32 %v1610_v14  ;;  %vm1814_vm10 = vmor %vm1812_vm9, %vm1813_vm8  ;;  %v1833_v50 = vand.u32 2147483648, %v1610_v14  ;;  %v1831_v20 = vand.u32 2147483647, %v1610_v14 }
 0x591   :  { %1864 = vst [vmem:[%s3242_s15 + $0x60] sm:$0xff] %v1805_v7  ;;  %v1809_v47 = vsub.f32 1.0, %v1808_v16  ;;  %vm1827_vm13 = vweird.f32 %v1610_v14 }
 0x592   :  { %v1834_v6 = vor.u32 1.1754944e-38, %v1833_v50  ;;  %vm1832_vm15 = vcmp.eq.f32.partialorder %v1831_v20, 8.507059e+37 }
 0x593   :  { %v1810_v2 = vmul.f32 %v2177_v59, %v1809_v47 }
 0x595   :  { %v2179_v62 = vpop.eup %2178  ;;  %v1811_v24 = vadd.f32 %v2177_v59, %v1810_v2 }
 0x596   :  { %v2181_v29 = vpop.eup %2180  ;;  %v1611_v33 = vadd.f32 1.0, %v2179_v62 }
 0x597   :  { %v1815_v27 = vsel %vm1814_vm10, %v2177_v59, %v1811_v24  ;;  %v1823_v32 = vmul.f32 %v2181_v29, %v1610_v14  ;;  %vm1828_vm12 = vweird.f32 %v2181_v29 }
 0x598   :  { %v1820_v46 = vsel %vm1817_vm11, %v1819_v55, %v1815_v27  ;;  %2182 = vrcp.f32 %v1611_v33  ;;  %vm1829_vm14 = vmor %vm1827_vm13, %vm1828_vm12  ;;  %v1848_v35 = vand.u32 2147483648, %v1611_v33  ;;  %v1846_v54 = vand.u32 2147483647, %v1611_v33 }
 0x599   :  { %1865 = vst [vmem:[%s3242_s15 + $0x68] sm:$0xff] %v1820_v46  ;;  %v1824_v53 = vsub.f32 1.0, %v1823_v32  ;;  %vm1842_vm1 = vweird.f32 %v1611_v33 }
 0x59a   :  { %v1849_v63 = vor.u32 1.1754944e-38, %v1848_v35  ;;  %vm1847_vm3 = vcmp.eq.f32.partialorder %v1846_v54, 8.507059e+37 }
 0x59b   :  { %v1825_v30 = vmul.f32 %v2181_v29, %v1824_v53 }
 0x59d   :  { %v1826_v43 = vadd.f32 %v2181_v29, %v1825_v30 }
 0x59e   :  { %v2183_v57 = vpop.eup %2182 }
 0x59f   :  { %v1830_v51 = vsel %vm1829_vm14, %v2181_v29, %v1826_v43  ;;  %v1838_v10 = vmul.f32 %v2183_v57, %v1611_v33  ;;  %vm1843_vm0 = vweird.f32 %v2183_v57 }
 0x5a0   :  { %v1835_v34 = vsel %vm1832_vm15, %v1834_v6, %v1830_v51  ;;  %vm1844_vm2 = vmor %vm1842_vm1, %vm1843_vm0 }
 0x5a1   :  { %1866 = vst [vmem:[%s3242_s15 + $0x70] sm:$0xff] %v1835_v34  ;;  %v1839_v11 = vsub.f32 1.0, %v1838_v10 }
 0x5a3   :  { %v1840_v12 = vmul.f32 %v2183_v57, %v1839_v11 }
 0x5a5   :  { %v1841_v5 = vadd.f32 %v2183_v57, %v1840_v12 }
 0x5a7   :  { %v1845_v15 = vsel %vm1844_vm2, %v2183_v57, %v1841_v5 }
 0x5a8   :  { %v1850_v40 = vsel %vm1847_vm3, %v1849_v63, %v1845_v15 }
 0x5a9   :  { %1867 = vst [vmem:[%s3242_s15 + $0x78] sm:$0xff] %v1850_v40 }

</bundles_post_ra>
